<compile_context>
chip_gen: v7x
topology: tpu7x:2x2x1
jax: 0.10.0
libtpu: 0.0.40
codegen_flags: <defaults>
</compile_context>

<pallas_src>
import functools

import jax
import jax.numpy as jnp
from jax.experimental import pallas as pl
from jax.experimental.pallas import tpu as pltpu

C_IN = 512          # GroupNorm(32, 512) in the module hard-codes 512 channels
C_OUT = 512
KERNEL = 3
STRIDE = 2
GROUPS = 32
CH_PER_GROUP = C_OUT // GROUPS
EPS = 1e-5


def _compute_pad(t):
    # Unit1D.compute_pad with kernel=3, stride=2
    if t % STRIDE == 0:
        return max(KERNEL - STRIDE, 0)
    return max(KERNEL - t % STRIDE, 0)


def _round_up(x, m):
    return ((x + m - 1) // m) * m


def _pick_batch_block(b, t_out_k, target_rows=512):
    """Batches packed per grid step.

    * target ~512 rows fills the MXU (256x256 on v6e/v7x, 128x128 on v5e)
      while per-step VMEM stays ~<= 12 MiB (under v5e's 16 MiB default scope).
    * nb is capped at ceil(b/2) so the grid has >= 2 steps whenever b >= 2
      (lets ("parallel",) shard across v7x's two TensorCores).
    * instead of forcing nb to divide b (which degraded to nb=1 for prime b),
      search a small window below the cap and pick the nb that minimizes the
      number of zero-padded batches; ties go to the larger nb.
    """
    nb_cap = max(1, min(target_rows // max(t_out_k, 1), (b + 1) // 2))
    lo = max(1, nb_cap // 2)
    best_nb, best_pad = lo, (-b) % lo
    for nb in range(lo, nb_cap + 1):
        padded = (-b) % nb
        if padded <= best_pad:
            best_nb, best_pad = nb, padded
    return best_nb


def ds_kernel(x_ref, w_ref, b_ref, gamma_ref, beta_ref, gmask_ref, gmaskt_ref,
              o_ref, *, nb, t_out, t_out_k):
    # x_ref:      (nb*t_out_k, 3*C_IN) bf16  (one im2col row per output step)
    # w_ref:      (3*C_IN, C_OUT)      bf16
    # b/gamma/beta_ref: (1, C_OUT)     f32
    # gmask_ref:  (C_OUT, GROUPS) f32 one-hot channel->group
    # gmaskt_ref: (GROUPS, C_OUT) f32 its transpose
    # o_ref:      (nb*t_out_k, C_OUT)  bf16
    m = nb * t_out_k

    # --- conv1d (k=3, stride=2) == one bf16 MXU matmul, f32 accumulate.
    # The conv bias is folded into the GroupNorm shift below, so zero-padded
    # rows (time padding to t_out_k and batch padding to b_pad) contribute
    # exactly 0 to the statistics and one VPU pass over (m,512) is saved.
    y = jnp.dot(x_ref[...], w_ref[...], preferred_element_type=jnp.float32)
    yb = y.reshape(nb, t_out_k, C_OUT)          # free: t_out_k % 8 == 0

    # --- GroupNorm(32, 512): per-(batch, group) stats over (ch_in_group, t) ---
    bias = b_ref[...]                           # (1, C_OUT)
    s1 = jnp.sum(yb, axis=1)                    # (nb, C_OUT)  sum_t y
    s2 = jnp.sum(yb * yb, axis=1)               # (nb, C_OUT)  sum_t y^2
    nt = jnp.float32(t_out)
    sum_c = s1 + nt * bias                      # stats of (y + bias), valid t only
    sq_c = s2 + 2.0 * bias * s1 + nt * bias * bias

    sum_g = jnp.dot(sum_c, gmask_ref[...], preferred_element_type=jnp.float32)  # (nb, G)
    sq_g = jnp.dot(sq_c, gmask_ref[...], preferred_element_type=jnp.float32)
    n = jnp.float32(t_out * CH_PER_GROUP)
    mean_g = sum_g / n
    # TODO(synk): E[x^2]-mean^2 in f32 with a clamp; switch to a shifted
    # two-pass variance if |mean| >> std groups show up in production.
    var_g = jnp.maximum(sq_g / n - mean_g * mean_g, 0.0)
    inv_g = jax.lax.rsqrt(var_g + EPS)

    mean_c = jnp.dot(mean_g, gmaskt_ref[...], preferred_element_type=jnp.float32)  # (nb, C_OUT)
    inv_c = jnp.dot(inv_g, gmaskt_ref[...], preferred_element_type=jnp.float32)

    # fold conv bias + GroupNorm affine into per-(batch,channel) scale/shift
    scale_c = inv_c * gamma_ref[...]
    shift_c = beta_ref[...] + (bias - mean_c) * scale_c

    out = yb * scale_c[:, None, :] + shift_c[:, None, :]
    o_ref[...] = jnp.maximum(out, 0.0).reshape(m, C_OUT).astype(o_ref.dtype)


def ds_forward(x, conv_w, conv_b, gamma, beta):
    """x: (B, C_in, T) float32 (PyTorch NCW).  Returns (B, C_out, T_out) float32."""
    B, C, T = x.shape
    assert C == C_IN

    # Unit1D 'same'-style asymmetric padding
    pad_t = _compute_pad(T)
    pad_f = pad_t // 2
    t_pad = T + pad_t
    t_out = (t_pad - KERNEL) // STRIDE + 1
    t_out_k = _round_up(t_out, 8)      # sublane-align so in-kernel reshapes are free

    nb = _pick_batch_block(B, t_out_k)
    b_pad = _round_up(B, nb)
    m = nb * t_out_k

    # bf16 BEFORE any relayout so transpose / pad / im2col move 2-byte elements.
    x_bf = x.astype(jnp.bfloat16)
    x_nwc = jnp.transpose(x_bf, (0, 2, 1))                          # (B, T, C)
    t_need = 2 * t_out_k + 1
    x_p = jnp.pad(x_nwc, ((0, b_pad - B), (pad_f, t_need - T - pad_f), (0, 0)))
    # 1.5x im2col: row t of batch b = [x_pad[2t] || x_pad[2t+1] || x_pad[2t+2]].
    # Rows with t >= t_out only read zero padding, so their (pre-bias) conv
    # output is exactly 0 and they drop out of the GroupNorm sums.
    x_im = jnp.concatenate(
        [x_p[:, 0:2 * t_out_k:2, :],
         x_p[:, 1:2 * t_out_k:2, :],
         x_p[:, 2:2 * t_out_k + 1:2, :]], axis=-1)                  # (b_pad, t_out_k, 3C)
    x2d = x_im.reshape(b_pad * t_out_k, KERNEL * C_IN)

    # conv weight (Cout, Cin, K) -> (3*Cin, Cout) bf16, matching the im2col order
    w = jnp.concatenate([conv_w[:, :, 0].T, conv_w[:, :, 1].T, conv_w[:, :, 2].T],
                        axis=0).astype(jnp.bfloat16)                # (1536, 512)
    b_row = conv_b.reshape(1, C_OUT).astype(jnp.float32)
    gamma_row = gamma.reshape(1, C_OUT).astype(jnp.float32)
    beta_row = beta.reshape(1, C_OUT).astype(jnp.float32)

    # group one-hot masks: built once here, passed as constant-index inputs
    ch = jnp.arange(C_OUT, dtype=jnp.int32)
    gmask = (ch[:, None] // CH_PER_GROUP ==
             jnp.arange(GROUPS, dtype=jnp.int32)[None, :]).astype(jnp.float32)  # (512, 32)
    gmask_t = jnp.transpose(gmask)                                               # (32, 512)

    kernel = functools.partial(ds_kernel, nb=nb, t_out=t_out, t_out_k=t_out_k)

    # Constant-index operands (weights / bias / affine / masks) are not
    # re-DMA'd across grid steps; total per-step VMEM at m<=512 is ~12 MiB, so
    # the default scoped limits are fine on all generations (pipeline_mode=
    # pl.Buffered(1) on the constants is only worth it if m is pushed to 1024).
    # TODO(synk): for very long sequences (t_out_k > ~512 with nb=1) add a
    # t_out tile axis with a two-pass GroupNorm so the block fits v7x/v5e VMEM
    # and supplies a second grid dimension for megacore sharding.
    out2d = pl.pallas_call(
        kernel,
        out_shape=jax.ShapeDtypeStruct((b_pad * t_out_k, C_OUT), jnp.bfloat16),
        grid_spec=pltpu.PrefetchScalarGridSpec(
            num_scalar_prefetch=0,
            grid=(b_pad // nb,),
            in_specs=[
                pl.BlockSpec((m, KERNEL * C_IN), lambda i: (i, 0)),
                pl.BlockSpec((KERNEL * C_IN, C_OUT), lambda i: (0, 0)),
                pl.BlockSpec((1, C_OUT), lambda i: (0, 0)),
                pl.BlockSpec((1, C_OUT), lambda i: (0, 0)),
                pl.BlockSpec((1, C_OUT), lambda i: (0, 0)),
                pl.BlockSpec((C_OUT, GROUPS), lambda i: (0, 0)),
                pl.BlockSpec((GROUPS, C_OUT), lambda i: (0, 0)),
            ],
            out_specs=pl.BlockSpec((m, C_OUT), lambda i: (i, 0)),
        ),
        compiler_params=pltpu.CompilerParams(
            dimension_semantics=("parallel",),
            vmem_limit_bytes=48 * 1024 * 1024),
    )(x2d, w, b_row, gamma_row, beta_row, gmask, gmask_t)

    out = out2d.reshape(b_pad, t_out_k, C_OUT)[:B, :t_out, :]
    # NCW transpose done on bf16 (half the HBM bytes); the final f32 convert
    # fuses with the transpose copy.  Downstream that tolerates bf16 can drop it.
    return jnp.transpose(out, (0, 2, 1)).astype(jnp.float32)


def ds_reference(x, conv_w, conv_b, gamma, beta):
    """Pure-JAX reference.  Matches the kernel's bf16-rounded conv operands so the
    comparison isolates indexing / GroupNorm correctness; the kernel additionally
    rounds its output to bf16 (deliberate perf choice), hence the ~2e-2 tolerance."""
    B, C, T = x.shape
    pad_t = _compute_pad(T)
    pad_f = pad_t // 2
    pad_b = pad_t - pad_f
    xp = jnp.pad(x, ((0, 0), (0, 0), (pad_f, pad_b)))
    t_pad = T + pad_t
    t_out = (t_pad - KERNEL) // STRIDE + 1

    xw = xp.astype(jnp.bfloat16).astype(jnp.float32)
    ww = conv_w.astype(jnp.bfloat16).astype(jnp.float32)
    y = conv_b[None, :, None]
    for k in range(KERNEL):
        xk = xw[:, :, k:k + STRIDE * t_out:STRIDE]                  # (B, C, t_out)
        y = y + jnp.einsum('oi,bit->bot', ww[:, :, k], xk,
                           precision=jax.lax.Precision.HIGHEST)

    yg = y.reshape(B, GROUPS, CH_PER_GROUP, t_out)
    mean = jnp.mean(yg, axis=(2, 3), keepdims=True)
    var = jnp.var(yg, axis=(2, 3), keepdims=True)
    yn = (yg - mean) * jax.lax.rsqrt(var + EPS)
    yn = yn.reshape(B, C_OUT, t_out) * gamma[None, :, None] + beta[None, :, None]
    return jnp.maximum(yn, 0.0)


if __name__ == "__main__":
    key = jax.random.PRNGKey(0)
    k_x, k_w, k_b = jax.random.split(key, 3)

    B, T = 2, 16
    x = jax.random.normal(k_x, (B, C_IN, T), dtype=jnp.float32)

    # deterministic parameter init (synthetic; no checkpoint)
    fan_in = C_IN * KERNEL
    bound = 1.0 / (fan_in ** 0.5)
    conv_w = jax.random.uniform(k_w, (C_OUT, C_IN, KERNEL),
                                minval=-bound, maxval=bound, dtype=jnp.float32)
    conv_b = jax.random.uniform(k_b, (C_OUT,),
                                minval=-bound, maxval=bound, dtype=jnp.float32)
    gamma = jnp.ones((C_OUT,), dtype=jnp.float32)   # GroupNorm default affine init
    beta = jnp.zeros((C_OUT,), dtype=jnp.float32)

    y = jax.jit(ds_forward)(x, conv_w, conv_b, gamma, beta)
    jax.block_until_ready(y)
    assert y.shape == (B, C_OUT, T // 2), y.shape

    y_ref = ds_reference(x, conv_w, conv_b, gamma, beta)
    err = float(jnp.max(jnp.abs(y - y_ref)))
    # tolerance covers the bf16 rounding of the kernel output (<= ~0.008 for
    # normalized activations) plus tiny f32 accumulation-order differences.
    assert err < 2e-2, f"max abs err vs reference: {err}"

    print("KERNEL_OK")
</pallas_src>

<mosaic_0001>
module attributes {stable_mosaic.version = 11 : i64} {
  func.func @ds_kernel(%arg0: i32, %arg1: memref<8x1536xbf16, #tpu.memory_space<vmem>>, %arg2: memref<1536x512xbf16, #tpu.memory_space<vmem>>, %arg3: memref<1x512xf32, #tpu.memory_space<vmem>>, %arg4: memref<1x512xf32, #tpu.memory_space<vmem>>, %arg5: memref<1x512xf32, #tpu.memory_space<vmem>>, %arg6: memref<512x32xf32, #tpu.memory_space<vmem>>, %arg7: memref<32x512xf32, #tpu.memory_space<vmem>>, %arg8: memref<8x512xbf16, #tpu.memory_space<vmem>>) attributes {dimension_semantics = [#tpu.dimension_semantics<parallel>], iteration_bounds = array<i64: 2>, scalar_prefetch = 0 : i64, scratch_operands = 0 : i64, tpu.core_type = #tpu.core_type<tc>, window_params = [{transform_indices = @transform_0, window_bounds = array<i64: 8, 1536>}, {pipeline_mode = #tpu.pipeline_mode<synchronous>, transform_indices = @transform_1, window_bounds = array<i64: 1536, 512>}, {pipeline_mode = #tpu.pipeline_mode<synchronous>, transform_indices = @transform_2, window_bounds = array<i64: 1, 512>}, {pipeline_mode = #tpu.pipeline_mode<synchronous>, transform_indices = @transform_3, window_bounds = array<i64: 1, 512>}, {pipeline_mode = #tpu.pipeline_mode<synchronous>, transform_indices = @transform_4, window_bounds = array<i64: 1, 512>}, {pipeline_mode = #tpu.pipeline_mode<synchronous>, transform_indices = @transform_5, window_bounds = array<i64: 512, 32>}, {pipeline_mode = #tpu.pipeline_mode<synchronous>, transform_indices = @transform_6, window_bounds = array<i64: 32, 512>}, {transform_indices = @transform_7, window_bounds = array<i64: 8, 512>}]} {
    %c0 = arith.constant 0 : index
    %c0_0 = arith.constant 0 : index
    %0 = vector.load %arg1[%c0, %c0_0] : memref<8x1536xbf16, #tpu.memory_space<vmem>>, vector<8x1536xbf16>
    %c0_1 = arith.constant 0 : index
    %c0_2 = arith.constant 0 : index
    %1 = vector.load %arg2[%c0_1, %c0_2] : memref<1536x512xbf16, #tpu.memory_space<vmem>>, vector<1536x512xbf16>
    %cst = arith.constant dense<0.000000e+00> : vector<8x512xf32>
    %2 = tpu.matmul %0, %1, %cst {dimension_numbers = #tpu.dot_dimension_numbers<[1], [0], [0], [1], [0, 0, 1, 1], [], []>} : vector<8x1536xbf16>, vector<1536x512xbf16>, vector<8x512xf32> -> vector<8x512xf32>
    %3 = vector.shape_cast %2 : vector<8x512xf32> to vector<1x8x512xf32>
    %c0_3 = arith.constant 0 : index
    %c0_4 = arith.constant 0 : index
    %4 = vector.load %arg3[%c0_3, %c0_4] : memref<1x512xf32, #tpu.memory_space<vmem>>, vector<1x512xf32>
    %cst_5 = arith.constant dense<0.000000e+00> : vector<1x512xf32>
    %5 = vector.multi_reduction <add>, %3, %cst_5 [1] : vector<1x8x512xf32> to vector<1x512xf32>
    %6 = arith.mulf %3, %3 : vector<1x8x512xf32>
    %cst_6 = arith.constant dense<0.000000e+00> : vector<1x512xf32>
    %7 = vector.multi_reduction <add>, %6, %cst_6 [1] : vector<1x8x512xf32> to vector<1x512xf32>
    %cst_7 = arith.constant 8.000000e+00 : f32
    %8 = vector.broadcast %cst_7 : f32 to vector<1x512xf32>
    %9 = arith.mulf %8, %4 : vector<1x512xf32>
    %10 = arith.addf %5, %9 : vector<1x512xf32>
    %cst_8 = arith.constant 2.000000e+00 : f32
    %11 = vector.broadcast %cst_8 : f32 to vector<1x512xf32>
    %12 = arith.mulf %11, %4 : vector<1x512xf32>
    %13 = arith.mulf %12, %5 : vector<1x512xf32>
    %14 = arith.addf %7, %13 : vector<1x512xf32>
    %cst_9 = arith.constant 8.000000e+00 : f32
    %15 = vector.broadcast %cst_9 : f32 to vector<1x512xf32>
    %16 = arith.mulf %15, %4 : vector<1x512xf32>
    %17 = arith.mulf %16, %4 : vector<1x512xf32>
    %18 = arith.addf %14, %17 : vector<1x512xf32>
    %c0_10 = arith.constant 0 : index
    %c0_11 = arith.constant 0 : index
    %19 = vector.load %arg6[%c0_10, %c0_11] : memref<512x32xf32, #tpu.memory_space<vmem>>, vector<512x32xf32>
    %cst_12 = arith.constant dense<0.000000e+00> : vector<1x32xf32>
    %20 = tpu.matmul %10, %19, %cst_12 {dimension_numbers = #tpu.dot_dimension_numbers<[1], [0], [0], [1], [0, 0, 1, 1], [], []>} : vector<1x512xf32>, vector<512x32xf32>, vector<1x32xf32> -> vector<1x32xf32>
    %c0_13 = arith.constant 0 : index
    %c0_14 = arith.constant 0 : index
    %21 = vector.load %arg6[%c0_13, %c0_14] : memref<512x32xf32, #tpu.memory_space<vmem>>, vector<512x32xf32>
    %cst_15 = arith.constant dense<0.000000e+00> : vector<1x32xf32>
    %22 = tpu.matmul %18, %21, %cst_15 {dimension_numbers = #tpu.dot_dimension_numbers<[1], [0], [0], [1], [0, 0, 1, 1], [], []>} : vector<1x512xf32>, vector<512x32xf32>, vector<1x32xf32> -> vector<1x32xf32>
    %cst_16 = arith.constant 1.280000e+02 : f32
    %23 = vector.broadcast %cst_16 : f32 to vector<1x32xf32>
    %24 = arith.divf %20, %23 : vector<1x32xf32>
    %cst_17 = arith.constant 1.280000e+02 : f32
    %25 = vector.broadcast %cst_17 : f32 to vector<1x32xf32>
    %26 = arith.divf %22, %25 : vector<1x32xf32>
    %27 = arith.mulf %24, %24 : vector<1x32xf32>
    %28 = arith.subf %26, %27 : vector<1x32xf32>
    %cst_18 = arith.constant 0.000000e+00 : f32
    %29 = vector.broadcast %cst_18 : f32 to vector<1x32xf32>
    %30 = arith.maximumf %28, %29 : vector<1x32xf32>
    %cst_19 = arith.constant 9.99999974E-6 : f32
    %31 = vector.broadcast %cst_19 : f32 to vector<1x32xf32>
    %32 = arith.addf %30, %31 : vector<1x32xf32>
    %33 = math.rsqrt %32 : vector<1x32xf32>
    %c0_20 = arith.constant 0 : index
    %c0_21 = arith.constant 0 : index
    %34 = vector.load %arg7[%c0_20, %c0_21] : memref<32x512xf32, #tpu.memory_space<vmem>>, vector<32x512xf32>
    %cst_22 = arith.constant dense<0.000000e+00> : vector<1x512xf32>
    %35 = tpu.matmul %24, %34, %cst_22 {dimension_numbers = #tpu.dot_dimension_numbers<[1], [0], [0], [1], [0, 0, 1, 1], [], []>} : vector<1x32xf32>, vector<32x512xf32>, vector<1x512xf32> -> vector<1x512xf32>
    %c0_23 = arith.constant 0 : index
    %c0_24 = arith.constant 0 : index
    %36 = vector.load %arg7[%c0_23, %c0_24] : memref<32x512xf32, #tpu.memory_space<vmem>>, vector<32x512xf32>
    %cst_25 = arith.constant dense<0.000000e+00> : vector<1x512xf32>
    %37 = tpu.matmul %33, %36, %cst_25 {dimension_numbers = #tpu.dot_dimension_numbers<[1], [0], [0], [1], [0, 0, 1, 1], [], []>} : vector<1x32xf32>, vector<32x512xf32>, vector<1x512xf32> -> vector<1x512xf32>
    %c0_26 = arith.constant 0 : index
    %c0_27 = arith.constant 0 : index
    %38 = vector.load %arg4[%c0_26, %c0_27] : memref<1x512xf32, #tpu.memory_space<vmem>>, vector<1x512xf32>
    %39 = arith.mulf %37, %38 : vector<1x512xf32>
    %c0_28 = arith.constant 0 : index
    %c0_29 = arith.constant 0 : index
    %40 = vector.load %arg5[%c0_28, %c0_29] : memref<1x512xf32, #tpu.memory_space<vmem>>, vector<1x512xf32>
    %41 = arith.subf %4, %35 : vector<1x512xf32>
    %42 = arith.mulf %41, %39 : vector<1x512xf32>
    %43 = arith.addf %40, %42 : vector<1x512xf32>
    %44 = vector.shape_cast %39 : vector<1x512xf32> to vector<1x1x512xf32>
    %45 = vector.broadcast %44 : vector<1x1x512xf32> to vector<1x8x512xf32>
    %46 = arith.mulf %3, %45 : vector<1x8x512xf32>
    %47 = vector.shape_cast %43 : vector<1x512xf32> to vector<1x1x512xf32>
    %48 = vector.broadcast %47 : vector<1x1x512xf32> to vector<1x8x512xf32>
    %49 = arith.addf %46, %48 : vector<1x8x512xf32>
    %cst_30 = arith.constant 0.000000e+00 : f32
    %50 = vector.broadcast %cst_30 : f32 to vector<1x8x512xf32>
    %51 = arith.maximumf %49, %50 : vector<1x8x512xf32>
    %52 = vector.shape_cast %51 : vector<1x8x512xf32> to vector<8x512xf32>
    %53 = arith.truncf %52 : vector<8x512xf32> to vector<8x512xbf16>
    %c0_31 = arith.constant 0 : index
    %c0_32 = arith.constant 0 : index
    %54 = vector.load %arg8[%c0_31, %c0_32] : memref<8x512xbf16, #tpu.memory_space<vmem>>, vector<8x512xbf16>
    tpu.vector_store %arg8[%c0_31, %c0_32], %53 {strides = array<i32>} : memref<8x512xbf16, #tpu.memory_space<vmem>>, vector<8x512xbf16>,
    return
  }
  func.func @transform_0(%arg0: i32) -> (i32, i32) {
    %c0_i32 = arith.constant 0 : i32
    %c0_i32_0 = arith.constant 0 : i32
    return %arg0, %c0_i32 : i32, i32
  }
  func.func @transform_1(%arg0: i32) -> (i32, i32) {
    %c0_i32 = arith.constant 0 : i32
    %c0_i32_0 = arith.constant 0 : i32
    %c0_i32_1 = arith.constant 0 : i32
    return %c0_i32, %c0_i32_0 : i32, i32
  }
  func.func @transform_2(%arg0: i32) -> (i32, i32) {
    %c0_i32 = arith.constant 0 : i32
    %c0_i32_0 = arith.constant 0 : i32
    %c0_i32_1 = arith.constant 0 : i32
    return %c0_i32, %c0_i32_0 : i32, i32
  }
  func.func @transform_3(%arg0: i32) -> (i32, i32) {
    %c0_i32 = arith.constant 0 : i32
    %c0_i32_0 = arith.constant 0 : i32
    %c0_i32_1 = arith.constant 0 : i32
    return %c0_i32, %c0_i32_0 : i32, i32
  }
  func.func @transform_4(%arg0: i32) -> (i32, i32) {
    %c0_i32 = arith.constant 0 : i32
    %c0_i32_0 = arith.constant 0 : i32
    %c0_i32_1 = arith.constant 0 : i32
    return %c0_i32, %c0_i32_0 : i32, i32
  }
  func.func @transform_5(%arg0: i32) -> (i32, i32) {
    %c0_i32 = arith.constant 0 : i32
    %c0_i32_0 = arith.constant 0 : i32
    %c0_i32_1 = arith.constant 0 : i32
    return %c0_i32, %c0_i32_0 : i32, i32
  }
  func.func @transform_6(%arg0: i32) -> (i32, i32) {
    %c0_i32 = arith.constant 0 : i32
    %c0_i32_0 = arith.constant 0 : i32
    %c0_i32_1 = arith.constant 0 : i32
    return %c0_i32, %c0_i32_0 : i32, i32
  }
  func.func @transform_7(%arg0: i32) -> (i32, i32) {
    %c0_i32 = arith.constant 0 : i32
    %c0_i32_0 = arith.constant 0 : i32
    return %arg0, %c0_i32 : i32, i32
  }
}

</mosaic_0001>

<bundles_post_ra>
// kernel: ds_forward.1
= control target key start
LH: loop header
LB: loop body
LE: loop exit
PB: predicated region body
PF: predicated region fallthrough
CT: control target
= control target key end

     0   :  { %s5559_s24 = smov 0   ;;  %s7239_s0 = inlined_call_operand.vmem [shape: bf16[16,1536], index: 0, kind: input, shape index: {}]   ;;  %s7240_s1 = inlined_call_operand.vmem [shape: bf16[1536,512], index: 1, kind: input, shape index: {}]   ;;  %s7241_s2 = inlined_call_operand.vmem [shape: f32[1,512], index: 2, kind: input, shape index: {}]   ;;  %s7242_s3 = inlined_call_operand.vmem [shape: f32[1,512], index: 3, kind: input, shape index: {}]   ;;  %s7243_s4 = inlined_call_operand.vmem [shape: f32[1,512], index: 4, kind: input, shape index: {}]   ;;  %s7244_s5 = inlined_call_operand.vmem [shape: f32[512,32], index: 5, kind: input, shape index: {}]   ;;  %s7245_s6 = inlined_call_operand.vmem [shape: f32[32,512], index: 6, kind: input, shape index: {}]   ;;  %s7246_s7 = inlined_call_operand.vmem [shape: bf16[16,512], index: 7, kind: output, shape index: {}]  }
   0x1 LB: > { %s4153_s25 = sadd.s32 4294967295, %s5515_s24   ;;  %p4157_p0 = scmp.ge.s32.totalorder %s5515_s24, 1  ;;  %s5515_s24 = sphi %s5559_s24, %s17_s24  }
   0x2   : > { %p237_p1 = scmp.lt.s32.totalorder %s5515_s24, 3 }
   0x4   : > { %p238_p2 = pnand %p4157_p0, %p237_p1 }
   0x6   : > { %241 = sbr.rel (%p238_p2) target bundleno = 1130 (0x46a), region = 48 }
   0xd   : > { %v4919_v0 = vld [vmem:[%s7240_s1 + $0x4] ss:$16 sps:$4 sm:$0xff]   ;;  %v4921_v1 = vld [vmem:[%s7240_s1 + $0xc] ss:$16 sps:$4 sm:$0xff]   ;;  %v4923_v2 = vld [vmem:[%s7240_s1] ss:$16 sps:$4 sm:$0xff]  }
   0xe   : > { %2631 = vmatprep.subr.bf16.mxu0 %v4919_v0  ;;  %v4924_v3 = vld [vmem:[%s7240_s1 + $0x8] ss:$16 sps:$4 sm:$0xff]   ;;  %2877 = vmatprep.subr.bf16.mxu1 %v4921_v1  ;;  %v4925_v4 = vld [vmem:[%s7240_s1 + $0x24] ss:$16 sps:$4 sm:$0xff]   ;;  %v4927_v5 = vld [vmem:[%s7240_s1 + $0x2c] ss:$16 sps:$4 sm:$0xff]  }
   0xf   : > { %2632 = vmatpush1.bf16.msra.mxu0 %v4923_v2  ;;  %2878 = vmatpush1.bf16.msra.mxu1 %v4924_v3  ;;  %v4929_v6 = vld [vmem:[%s7240_s1 + $0x20] ss:$16 sps:$4 sm:$0xff]   ;;  %v4930_v7 = vld [vmem:[%s7240_s1 + $0x28] ss:$16 sps:$4 sm:$0xff]   ;;  %v4931_v8 = vld [vmem:[%s7240_s1 + $0x44] ss:$16 sps:$4 sm:$0xff]  }
  0x10   : > { %2633 = vmatprep.subr.bf16.mxu0 %v4925_v4  ;;  %2879 = vmatprep.subr.bf16.mxu1 %v4927_v5  ;;  %v4933_v9 = vld [vmem:[%s7240_s1 + $0x4c] ss:$16 sps:$4 sm:$0xff]   ;;  %v4935_v10 = vld [vmem:[%s7240_s1 + $0x40] ss:$16 sps:$4 sm:$0xff]   ;;  %v4936_v11 = vld [vmem:[%s7240_s1 + $0x48] ss:$16 sps:$4 sm:$0xff]  }
  0x11   : > { %v4937_v12 = vld [vmem:[%s7240_s1 + $0x64] ss:$16 sps:$4 sm:$0xff]   ;;  %v4939_v13 = vld [vmem:[%s7240_s1 + $0x6c] ss:$16 sps:$4 sm:$0xff]   ;;  %v4941_v14 = vld [vmem:[%s7240_s1 + $0x60] ss:$16 sps:$4 sm:$0xff]  }
  0x12   : > { %v4942_v15 = vld [vmem:[%s7240_s1 + $0x68] ss:$16 sps:$4 sm:$0xff]   ;;  %v4943_v16 = vld [vmem:[%s7240_s1 + $0x84] ss:$16 sps:$4 sm:$0xff]   ;;  %v4945_v17 = vld [vmem:[%s7240_s1 + $0x8c] ss:$16 sps:$4 sm:$0xff]  }
  0x13   : > { %2634 = vmatpush1.bf16.msra.mxu0 %v4929_v6  ;;  %2880 = vmatpush1.bf16.msra.mxu1 %v4930_v7  ;;  %v4947_v18 = vld [vmem:[%s7240_s1 + $0x80] ss:$16 sps:$4 sm:$0xff]   ;;  %v4948_v19 = vld [vmem:[%s7240_s1 + $0x88] ss:$16 sps:$4 sm:$0xff]   ;;  %v4949_v20 = vld [vmem:[%s7240_s1 + $0xa4] ss:$16 sps:$4 sm:$0xff]  }
  0x14   : > { %2635 = vmatprep.subr.bf16.mxu0 %v4931_v8  ;;  %2881 = vmatprep.subr.bf16.mxu1 %v4933_v9  ;;  %v4951_v21 = vld [vmem:[%s7240_s1 + $0xac] ss:$16 sps:$4 sm:$0xff]   ;;  %v4953_v22 = vld [vmem:[%s7240_s1 + $0xa0] ss:$16 sps:$4 sm:$0xff]   ;;  %v4954_v23 = vld [vmem:[%s7240_s1 + $0xa8] ss:$16 sps:$4 sm:$0xff]  }
  0x15   : > { %v4955_v24 = vld [vmem:[%s7240_s1 + $0xc4] ss:$16 sps:$4 sm:$0xff]   ;;  %v4957_v25 = vld [vmem:[%s7240_s1 + $0xcc] ss:$16 sps:$4 sm:$0xff]   ;;  %v4959_v26 = vld [vmem:[%s7240_s1 + $0xc0] ss:$16 sps:$4 sm:$0xff]  }
  0x16   : > { %v4960_v27 = vld [vmem:[%s7240_s1 + $0xc8] ss:$16 sps:$4 sm:$0xff]   ;;  %v4961_v28 = vld [vmem:[%s7240_s1 + $0xe4] ss:$16 sps:$4 sm:$0xff]   ;;  %v4963_v29 = vld [vmem:[%s7240_s1 + $0xec] ss:$16 sps:$4 sm:$0xff]  }
  0x17   : > { %2636 = vmatpush1.bf16.msra.mxu0 %v4935_v10  ;;  %2882 = vmatpush1.bf16.msra.mxu1 %v4936_v11  ;;  %v4965_v30 = vld [vmem:[%s7240_s1 + $0xe0] ss:$16 sps:$4 sm:$0xff]   ;;  %p269_p3 = scmp.lt.s32.totalorder %s4153_s25, 1  ;;  %v4966_v31 = vld [vmem:[%s7240_s1 + $0xe8] ss:$16 sps:$4 sm:$0xff]   ;;  %vm3652_vm0 = vcmask 261120  }
  0x18   : > { %2637 = vmatprep.subr.bf16.mxu0 %v4937_v12  ;;  %2883 = vmatprep.subr.bf16.mxu1 %v4939_v13  ;;  %v4967_v32 = vld [vmem:[%s7240_s1 + $0x104] ss:$16 sps:$4 sm:$0xff]   ;;  %v4969_v33 = vld [vmem:[%s7240_s1 + $0x10c] ss:$16 sps:$4 sm:$0xff]   ;;  %v4971_v34 = vld [vmem:[%s7240_s1 + $0x100] ss:$16 sps:$4 sm:$0xff]  }
  0x19   : > { %v4972_v35 = vld [vmem:[%s7240_s1 + $0x108] ss:$16 sps:$4 sm:$0xff]   ;;  %s7287_s25 = smov (!%p269_p3, %s4153_s25), 1  ;;  %v4973_v36 = vld [vmem:[%s7240_s1 + $0x124] ss:$16 sps:$4 sm:$0xff]  }
  0x1a   : > { %v4975_v37 = vld [vmem:[%s7240_s1 + $0x12c] ss:$16 sps:$4 sm:$0xff]   ;;  %v4977_v38 = vld [vmem:[%s7240_s1 + $0x120] ss:$16 sps:$4 sm:$0xff]   ;;  %s4908_s18 = smul.u32 48, %s7287_s25  ;;  %s4565_s23 = sshll.u32 %s7287_s25, 4 }
  0x1b   : > { %2638 = vmatpush1.bf16.msra.mxu0 %v4941_v14  ;;  %2884 = vmatpush1.bf16.msra.mxu1 %v4942_v15  ;;  %v4978_v39 = vld [vmem:[%s7240_s1 + $0x128] ss:$16 sps:$4 sm:$0xff]   ;;  %v4979_v40 = vld [vmem:[%s7240_s1 + $0x144] ss:$16 sps:$4 sm:$0xff]   ;;  %v4981_v41 = vld [vmem:[%s7240_s1 + $0x14c] ss:$16 sps:$4 sm:$0xff]   ;;  %s278_s28 = scalar_lea.vmem %s7246_s7, %s4565_s23 }
  0x1c   : > { %2639 = vmatprep.subr.bf16.mxu0 %v4943_v16  ;;  %2885 = vmatprep.subr.bf16.mxu1 %v4945_v17  ;;  %v4983_v42 = vld [vmem:[%s7240_s1 + $0x140] ss:$16 sps:$4 sm:$0xff]   ;;  %v4984_v43 = vld [vmem:[%s7240_s1 + $0x148] ss:$16 sps:$4 sm:$0xff]   ;;  %s5709_s10 = scalar_lea.vmem %s7239_s0, %s4908_s18  ;;  %v4985_v44 = vld [vmem:[%s7240_s1 + $0x164] ss:$16 sps:$4 sm:$0xff]  }
  0x1d   : > { %v4987_v45 = vld [vmem:[%s7240_s1 + $0x16c] ss:$16 sps:$4 sm:$0xff]   ;;  %v279_v46 = vld [vmem:[%s5709_s10] sm:$0xff]  ;;  %v4990_v49 = vld [vmem:[%s7240_s1 + $0x168] ss:$16 sps:$4 sm:$0xff]  }
  0x1e   : > { %v4989_v47 = vld [vmem:[%s7240_s1 + $0x160] ss:$16 sps:$4 sm:$0xff]   ;;  %v4162_v48 = vcombine.high %v279_v46, %v279_v46  ;;  %v4991_v50 = vld [vmem:[%s7240_s1 + $0x184] ss:$16 sps:$4 sm:$0xff]   ;;  %v4993_v51 = vld [vmem:[%s7240_s1 + $0x18c] ss:$16 sps:$4 sm:$0xff]   ;;  %v4161_v4 = vcombine.low %v279_v46, %v279_v46 }
  0x1f   : > { %2640 = vmatpush1.bf16.msra.mxu0 %v4947_v18  ;;  %2886 = vmatpush1.bf16.msra.mxu1 %v4948_v19  ;;  %v4995_v52 = vld [vmem:[%s7240_s1 + $0x180] ss:$16 sps:$4 sm:$0xff]   ;;  %v4996_v53 = vld [vmem:[%s7240_s1 + $0x188] ss:$16 sps:$4 sm:$0xff]   ;;  %v4997_v54 = vld [vmem:[%s7240_s1 + $0x1a4] ss:$16 sps:$4 sm:$0xff]  }
  0x20   : > { %2641 = vmatprep.subr.bf16.mxu0 %v4949_v20  ;;  %2887 = vmatprep.subr.bf16.mxu1 %v4951_v21  ;;  %v4999_v55 = vld [vmem:[%s7240_s1 + $0x1ac] ss:$16 sps:$4 sm:$0xff]   ;;  %v5001_v56 = vld [vmem:[%s7240_s1 + $0x1a0] ss:$16 sps:$4 sm:$0xff]   ;;  %v5002_v57 = vld [vmem:[%s7240_s1 + $0x1a8] ss:$16 sps:$4 sm:$0xff]  }
  0x21   : > { %2663 = vmatprep.mubr.bf16.mxu0 %v4162_v48  ;;  %2909 = vmatprep.mubr.bf16.mxu1 %v4162_v48  ;;  %v5003_v58 = vld [vmem:[%s7240_s1 + $0x1c4] ss:$16 sps:$4 sm:$0xff]   ;;  %v5005_v59 = vld [vmem:[%s7240_s1 + $0x1cc] ss:$16 sps:$4 sm:$0xff]   ;;  %v5007_v60 = vld [vmem:[%s7240_s1 + $0x1c0] ss:$16 sps:$4 sm:$0xff]  }
  0x22   : > { %v5008_v61 = vld [vmem:[%s7240_s1 + $0x1c8] ss:$16 sps:$4 sm:$0xff]   ;;  %v5009_v62 = vld [vmem:[%s7240_s1 + $0x1e4] ss:$16 sps:$4 sm:$0xff]   ;;  %v5011_v63 = vld [vmem:[%s7240_s1 + $0x1ec] ss:$16 sps:$4 sm:$0xff]  }
  0x23   : > { %2642 = vmatpush1.bf16.msra.mxu0 %v4953_v22  ;;  %2888 = vmatpush1.bf16.msra.mxu1 %v4954_v23  ;;  %v5013_v0 = vld [vmem:[%s7240_s1 + $0x1e0] ss:$16 sps:$4 sm:$0xff]   ;;  %v5014_v1 = vld [vmem:[%s7240_s1 + $0x1e8] ss:$16 sps:$4 sm:$0xff]   ;;  %v5019_v2 = vld [vmem:[%s7240_s1 + $0x204] ss:$16 sps:$4 sm:$0xff]  }
  0x24   : > { %2643 = vmatprep.subr.bf16.mxu0 %v4955_v24  ;;  %2889 = vmatprep.subr.bf16.mxu1 %v4957_v25  ;;  %v5022_v3 = vld [vmem:[%s7240_s1 + $0x20c] ss:$16 sps:$4 sm:$0xff]   ;;  %v5017_v5 = vld [vmem:[%s7240_s1 + $0x200] ss:$16 sps:$4 sm:$0xff]   ;;  %v5020_v6 = vld [vmem:[%s7240_s1 + $0x208] ss:$16 sps:$4 sm:$0xff]  }
  0x25   : > { %v5025_v7 = vld [vmem:[%s7240_s1 + $0x224] ss:$16 sps:$4 sm:$0xff]   ;;  %v5028_v8 = vld [vmem:[%s7240_s1 + $0x22c] ss:$16 sps:$4 sm:$0xff]   ;;  %v5023_v9 = vld [vmem:[%s7240_s1 + $0x220] ss:$16 sps:$4 sm:$0xff]  }
  0x26   : > { %v5026_v10 = vld [vmem:[%s7240_s1 + $0x228] ss:$16 sps:$4 sm:$0xff]   ;;  %v5031_v11 = vld [vmem:[%s7240_s1 + $0x244] ss:$16 sps:$4 sm:$0xff]   ;;  %v5034_v12 = vld [vmem:[%s7240_s1 + $0x24c] ss:$16 sps:$4 sm:$0xff]  }
  0x27   : > { %2644 = vmatpush1.bf16.msra.mxu0 %v4959_v26  ;;  %2890 = vmatpush1.bf16.msra.mxu1 %v4960_v27  ;;  %v5029_v13 = vld [vmem:[%s7240_s1 + $0x240] ss:$16 sps:$4 sm:$0xff]   ;;  %v5032_v14 = vld [vmem:[%s7240_s1 + $0x248] ss:$16 sps:$4 sm:$0xff]   ;;  %v5037_v15 = vld [vmem:[%s7240_s1 + $0x264] ss:$16 sps:$4 sm:$0xff]  }
  0x28   : > { %2645 = vmatprep.subr.bf16.mxu0 %v4961_v28  ;;  %2891 = vmatprep.subr.bf16.mxu1 %v4963_v29  ;;  %v5040_v16 = vld [vmem:[%s7240_s1 + $0x26c] ss:$16 sps:$4 sm:$0xff]   ;;  %v5035_v17 = vld [vmem:[%s7240_s1 + $0x260] ss:$16 sps:$4 sm:$0xff]   ;;  %v5038_v18 = vld [vmem:[%s7240_s1 + $0x268] ss:$16 sps:$4 sm:$0xff]  }
  0x29   : > { %v5043_v19 = vld [vmem:[%s7240_s1 + $0x284] ss:$16 sps:$4 sm:$0xff]   ;;  %v5046_v20 = vld [vmem:[%s7240_s1 + $0x28c] ss:$16 sps:$4 sm:$0xff]   ;;  %v5041_v21 = vld [vmem:[%s7240_s1 + $0x280] ss:$16 sps:$4 sm:$0xff]  }
  0x2a   : > { %v5044_v22 = vld [vmem:[%s7240_s1 + $0x288] ss:$16 sps:$4 sm:$0xff]   ;;  %v5049_v23 = vld [vmem:[%s7240_s1 + $0x2a4] ss:$16 sps:$4 sm:$0xff]   ;;  %v5052_v24 = vld [vmem:[%s7240_s1 + $0x2ac] ss:$16 sps:$4 sm:$0xff]  }
  0x2b   : > { %2646 = vmatpush1.bf16.msra.mxu0 %v4965_v30  ;;  %2892 = vmatpush1.bf16.msra.mxu1 %v4966_v31  ;;  %v5047_v25 = vld [vmem:[%s7240_s1 + $0x2a0] ss:$16 sps:$4 sm:$0xff]   ;;  %v5050_v26 = vld [vmem:[%s7240_s1 + $0x2a8] ss:$16 sps:$4 sm:$0xff]   ;;  %v5055_v27 = vld [vmem:[%s7240_s1 + $0x2c4] ss:$16 sps:$4 sm:$0xff]  }
  0x2c   : > { %2647 = vmatprep.subr.bf16.mxu0 %v4967_v32  ;;  %2893 = vmatprep.subr.bf16.mxu1 %v4969_v33  ;;  %v5058_v28 = vld [vmem:[%s7240_s1 + $0x2cc] ss:$16 sps:$4 sm:$0xff]   ;;  %v5053_v31 = vld [vmem:[%s7240_s1 + $0x2c0] ss:$16 sps:$4 sm:$0xff]   ;;  %v5056_v32 = vld [vmem:[%s7240_s1 + $0x2c8] ss:$16 sps:$4 sm:$0xff]  }
  0x2d   : > { %v5851_v29 = vld [vmem:[%s5709_s10 + $0x8] sm:$0xff]  ;;  %v5061_v33 = vld [vmem:[%s7240_s1 + $0x2e4] ss:$16 sps:$4 sm:$0xff]  }
  0x2e   : > { %v4164_v30 = vcombine.high %v5851_v29, %v5851_v29  ;;  %v5082_v46 = vld [vmem:[%s7240_s1 + $0x34c] ss:$16 sps:$4 sm:$0xff]   ;;  %v5080_v48 = vld [vmem:[%s7240_s1 + $0x348] ss:$16 sps:$4 sm:$0xff]  }
  0x2f   : > { %2648 = vmatpush1.bf16.msra.mxu0 %v4971_v34  ;;  %2894 = vmatpush1.bf16.msra.mxu1 %v4972_v35  ;;  %v5064_v34 = vld [vmem:[%s7240_s1 + $0x2ec] ss:$16 sps:$4 sm:$0xff]   ;;  %v5059_v35 = vld [vmem:[%s7240_s1 + $0x2e0] ss:$16 sps:$4 sm:$0xff]  }
  0x30   : > { %2649 = vmatprep.subr.bf16.mxu0 %v4973_v36  ;;  %2895 = vmatprep.subr.bf16.mxu1 %v4975_v37  ;;  %v5062_v36 = vld [vmem:[%s7240_s1 + $0x2e8] ss:$16 sps:$4 sm:$0xff]   ;;  %v5067_v37 = vld [vmem:[%s7240_s1 + $0x304] ss:$16 sps:$4 sm:$0xff]  }
  0x33   : > { %2650 = vmatpush1.bf16.msra.mxu0 %v4977_v38  ;;  %2896 = vmatpush1.bf16.msra.mxu1 %v4978_v39  ;;  %v5070_v38 = vld [vmem:[%s7240_s1 + $0x30c] ss:$16 sps:$4 sm:$0xff]   ;;  %v5065_v39 = vld [vmem:[%s7240_s1 + $0x300] ss:$16 sps:$4 sm:$0xff]  }
  0x34   : > { %2651 = vmatprep.subr.bf16.mxu0 %v4979_v40  ;;  %2897 = vmatprep.subr.bf16.mxu1 %v4981_v41  ;;  %v5068_v40 = vld [vmem:[%s7240_s1 + $0x308] ss:$16 sps:$4 sm:$0xff]   ;;  %v5073_v41 = vld [vmem:[%s7240_s1 + $0x324] ss:$16 sps:$4 sm:$0xff]  }
  0x37   : > { %2652 = vmatpush1.bf16.msra.mxu0 %v4983_v42  ;;  %2898 = vmatpush1.bf16.msra.mxu1 %v4984_v43  ;;  %v5076_v42 = vld [vmem:[%s7240_s1 + $0x32c] ss:$16 sps:$4 sm:$0xff]   ;;  %v5071_v43 = vld [vmem:[%s7240_s1 + $0x320] ss:$16 sps:$4 sm:$0xff]  }
  0x38   : > { %2653 = vmatprep.subr.bf16.mxu0 %v4985_v44  ;;  %2899 = vmatprep.subr.bf16.mxu1 %v4987_v45  ;;  %v5074_v44 = vld [vmem:[%s7240_s1 + $0x328] ss:$16 sps:$4 sm:$0xff]   ;;  %v5079_v45 = vld [vmem:[%s7240_s1 + $0x344] ss:$16 sps:$4 sm:$0xff]  }
  0x3b   : > { %2654 = vmatpush1.bf16.msra.mxu0 %v4989_v47  ;;  %2900 = vmatpush1.bf16.msra.mxu1 %v4990_v49  ;;  %v5077_v47 = vld [vmem:[%s7240_s1 + $0x340] ss:$16 sps:$4 sm:$0xff]   ;;  %v5085_v49 = vld [vmem:[%s7240_s1 + $0x364] ss:$16 sps:$4 sm:$0xff]  }
  0x3c   : > { %2655 = vmatprep.subr.bf16.mxu0 %v4991_v50  ;;  %2901 = vmatprep.subr.bf16.mxu1 %v4993_v51  ;;  %v5088_v50 = vld [vmem:[%s7240_s1 + $0x36c] ss:$16 sps:$4 sm:$0xff]   ;;  %v5083_v51 = vld [vmem:[%s7240_s1 + $0x360] ss:$16 sps:$4 sm:$0xff]  }
  0x3f   : > { %2656 = vmatpush1.bf16.msra.mxu0 %v4995_v52  ;;  %2902 = vmatpush1.bf16.msra.mxu1 %v4996_v53  ;;  %v5086_v52 = vld [vmem:[%s7240_s1 + $0x368] ss:$16 sps:$4 sm:$0xff]   ;;  %v5091_v53 = vld [vmem:[%s7240_s1 + $0x384] ss:$16 sps:$4 sm:$0xff]  }
  0x40   : > { %2657 = vmatprep.subr.bf16.mxu0 %v4997_v54  ;;  %2903 = vmatprep.subr.bf16.mxu1 %v4999_v55  ;;  %v5094_v54 = vld [vmem:[%s7240_s1 + $0x38c] ss:$16 sps:$4 sm:$0xff]   ;;  %v5089_v55 = vld [vmem:[%s7240_s1 + $0x380] ss:$16 sps:$4 sm:$0xff]  }
  0x43   : > { %2658 = vmatpush1.bf16.msra.mxu0 %v5001_v56  ;;  %2904 = vmatpush1.bf16.msra.mxu1 %v5002_v57  ;;  %v5092_v56 = vld [vmem:[%s7240_s1 + $0x388] ss:$16 sps:$4 sm:$0xff]   ;;  %v5097_v57 = vld [vmem:[%s7240_s1 + $0x3a4] ss:$16 sps:$4 sm:$0xff]  }
  0x44   : > { %2659 = vmatprep.subr.bf16.mxu0 %v5003_v58  ;;  %2905 = vmatprep.subr.bf16.mxu1 %v5005_v59  ;;  %v5100_v58 = vld [vmem:[%s7240_s1 + $0x3ac] ss:$16 sps:$4 sm:$0xff]   ;;  %v5095_v59 = vld [vmem:[%s7240_s1 + $0x3a0] ss:$16 sps:$4 sm:$0xff]  }
  0x47   : > { %2660 = vmatpush1.bf16.msra.mxu0 %v5007_v60  ;;  %2906 = vmatpush1.bf16.msra.mxu1 %v5008_v61  ;;  %v5098_v60 = vld [vmem:[%s7240_s1 + $0x3a8] ss:$16 sps:$4 sm:$0xff]   ;;  %v5103_v61 = vld [vmem:[%s7240_s1 + $0x3c4] ss:$16 sps:$4 sm:$0xff]  }
  0x48   : > { %2661 = vmatprep.subr.bf16.mxu0 %v5009_v62  ;;  %2907 = vmatprep.subr.bf16.mxu1 %v5011_v63  ;;  %v5106_v62 = vld [vmem:[%s7240_s1 + $0x3cc] ss:$16 sps:$4 sm:$0xff]   ;;  %v5101_v63 = vld [vmem:[%s7240_s1 + $0x3c0] ss:$16 sps:$4 sm:$0xff]  }
  0x4b   : > { %2662 = vmatpush1.bf16.msra.mxu0 %v5013_v0  ;;  %2908 = vmatpush1.bf16.msra.mxu1 %v5014_v1  ;;  %v5104_v0 = vld [vmem:[%s7240_s1 + $0x3c8] ss:$16 sps:$4 sm:$0xff]   ;;  %v5109_v1 = vld [vmem:[%s7240_s1 + $0x3e4] ss:$16 sps:$4 sm:$0xff]  }
  0x4c   : > { %2672 = vmatprep.subr.bf16.mxu0 %v5019_v2  ;;  %2918 = vmatprep.subr.bf16.mxu1 %v5022_v3  ;;  %v5112_v2 = vld [vmem:[%s7240_s1 + $0x3ec] ss:$16 sps:$4 sm:$0xff]   ;;  %v5107_v3 = vld [vmem:[%s7240_s1 + $0x3e0] ss:$16 sps:$4 sm:$0xff]  }
  0x4e   : > { %2664 = vmatmul.mubr.bf16.vlgmr.msra.gmra.mrb[0].mxu0 %v4161_v4  ;;  %2910 = vmatmul.mubr.bf16.vlgmr.msra.gmra.mrb[0].mxu1 %v4161_v4  ;;  %v5110_v4 = vld [vmem:[%s7240_s1 + $0x3e8] ss:$16 sps:$4 sm:$0xff]  }
  0x4f   : > { %2673 = vmatpush1.bf16.msra.mxu0 %v5017_v5  ;;  %2919 = vmatpush1.bf16.msra.mxu1 %v5020_v6  ;;  %v5117_v5 = vld [vmem:[%s7240_s1 + $0x404] ss:$16 sps:$4 sm:$0xff]   ;;  %v5120_v6 = vld [vmem:[%s7240_s1 + $0x40c] ss:$16 sps:$4 sm:$0xff]  }
  0x50   : > { %2674 = vmatprep.subr.bf16.mxu0 %v5025_v7  ;;  %2920 = vmatprep.subr.bf16.mxu1 %v5028_v8  ;;  %v4163_v7 = vcombine.low %v5851_v29, %v5851_v29  ;;  %v5115_v8 = vld [vmem:[%s7240_s1 + $0x400] ss:$16 sps:$4 sm:$0xff]   ;;  %v5150_v29 = vld [vmem:[%s7240_s1 + $0x4ac] ss:$16 sps:$4 sm:$0xff]  }
  0x51   : > { %2704 = vmatprep.mubr.bf16.mxu0 %v4164_v30  ;;  %2950 = vmatprep.mubr.bf16.mxu1 %v4164_v30  ;;  %v5145_v30 = vld [vmem:[%s7240_s1 + $0x4a0] ss:$16 sps:$4 sm:$0xff]  }
  0x53   : > { %2675 = vmatpush1.bf16.msra.mxu0 %v5023_v9  ;;  %2921 = vmatpush1.bf16.msra.mxu1 %v5026_v10  ;;  %v5118_v9 = vld [vmem:[%s7240_s1 + $0x408] ss:$16 sps:$4 sm:$0xff]   ;;  %v5123_v10 = vld [vmem:[%s7240_s1 + $0x424] ss:$16 sps:$4 sm:$0xff]  }
  0x54   : > { %2676 = vmatprep.subr.bf16.mxu0 %v5031_v11  ;;  %2922 = vmatprep.subr.bf16.mxu1 %v5034_v12  ;;  %v5987_v11 = vld [vmem:[%s5709_s10 + $0x10] sm:$0xff]  ;;  %v5126_v12 = vld [vmem:[%s7240_s1 + $0x42c] ss:$16 sps:$4 sm:$0xff]  }
  0x57   : > { %2677 = vmatpush1.bf16.msra.mxu0 %v5029_v13  ;;  %2923 = vmatpush1.bf16.msra.mxu1 %v5032_v14  ;;  %v4166_v13 = vcombine.high %v5987_v11, %v5987_v11  ;;  %v5121_v14 = vld [vmem:[%s7240_s1 + $0x420] ss:$16 sps:$4 sm:$0xff]  }
  0x58   : > { %2678 = vmatprep.subr.bf16.mxu0 %v5037_v15  ;;  %2924 = vmatprep.subr.bf16.mxu1 %v5040_v16  ;;  %v5124_v15 = vld [vmem:[%s7240_s1 + $0x428] ss:$16 sps:$4 sm:$0xff]   ;;  %v5129_v16 = vld [vmem:[%s7240_s1 + $0x444] ss:$16 sps:$4 sm:$0xff]  }
  0x5b   : > { %2679 = vmatpush1.bf16.msra.mxu0 %v5035_v17  ;;  %2925 = vmatpush1.bf16.msra.mxu1 %v5038_v18  ;;  %v5132_v17 = vld [vmem:[%s7240_s1 + $0x44c] ss:$16 sps:$4 sm:$0xff]   ;;  %v5127_v18 = vld [vmem:[%s7240_s1 + $0x440] ss:$16 sps:$4 sm:$0xff]  }
  0x5c   : > { %2680 = vmatprep.subr.bf16.mxu0 %v5043_v19  ;;  %2926 = vmatprep.subr.bf16.mxu1 %v5046_v20  ;;  %v5130_v19 = vld [vmem:[%s7240_s1 + $0x448] ss:$16 sps:$4 sm:$0xff]   ;;  %v5135_v20 = vld [vmem:[%s7240_s1 + $0x464] ss:$16 sps:$4 sm:$0xff]  }
  0x5f   : > { %2681 = vmatpush1.bf16.msra.mxu0 %v5041_v21  ;;  %2927 = vmatpush1.bf16.msra.mxu1 %v5044_v22  ;;  %v5138_v21 = vld [vmem:[%s7240_s1 + $0x46c] ss:$16 sps:$4 sm:$0xff]   ;;  %v5133_v22 = vld [vmem:[%s7240_s1 + $0x460] ss:$16 sps:$4 sm:$0xff]  }
  0x60   : > { %2682 = vmatprep.subr.bf16.mxu0 %v5049_v23  ;;  %2928 = vmatprep.subr.bf16.mxu1 %v5052_v24  ;;  %v5136_v23 = vld [vmem:[%s7240_s1 + $0x468] ss:$16 sps:$4 sm:$0xff]   ;;  %v5141_v24 = vld [vmem:[%s7240_s1 + $0x484] ss:$16 sps:$4 sm:$0xff]  }
  0x63   : > { %2683 = vmatpush1.bf16.msra.mxu0 %v5047_v25  ;;  %2929 = vmatpush1.bf16.msra.mxu1 %v5050_v26  ;;  %v5144_v25 = vld [vmem:[%s7240_s1 + $0x48c] ss:$16 sps:$4 sm:$0xff]   ;;  %v5139_v26 = vld [vmem:[%s7240_s1 + $0x480] ss:$16 sps:$4 sm:$0xff]  }
  0x64   : > { %2684 = vmatprep.subr.bf16.mxu0 %v5055_v27  ;;  %2930 = vmatprep.subr.bf16.mxu1 %v5058_v28  ;;  %v5142_v27 = vld [vmem:[%s7240_s1 + $0x488] ss:$16 sps:$4 sm:$0xff]   ;;  %v5147_v28 = vld [vmem:[%s7240_s1 + $0x4a4] ss:$16 sps:$4 sm:$0xff]  }
  0x67   : > { %2685 = vmatpush1.bf16.msra.mxu0 %v5053_v31  ;;  %2931 = vmatpush1.bf16.msra.mxu1 %v5056_v32  ;;  %v5148_v31 = vld [vmem:[%s7240_s1 + $0x4a8] ss:$16 sps:$4 sm:$0xff]   ;;  %v5153_v32 = vld [vmem:[%s7240_s1 + $0x4c4] ss:$16 sps:$4 sm:$0xff]  }
  0x68   : > { %2686 = vmatprep.subr.bf16.mxu0 %v5061_v33  ;;  %2932 = vmatprep.subr.bf16.mxu1 %v5064_v34  ;;  %v5156_v33 = vld [vmem:[%s7240_s1 + $0x4cc] ss:$16 sps:$4 sm:$0xff]   ;;  %v5151_v34 = vld [vmem:[%s7240_s1 + $0x4c0] ss:$16 sps:$4 sm:$0xff]  }
  0x6b   : > { %2687 = vmatpush1.bf16.msra.mxu0 %v5059_v35  ;;  %2933 = vmatpush1.bf16.msra.mxu1 %v5062_v36  ;;  %v5154_v35 = vld [vmem:[%s7240_s1 + $0x4c8] ss:$16 sps:$4 sm:$0xff]   ;;  %v5159_v36 = vld [vmem:[%s7240_s1 + $0x4e4] ss:$16 sps:$4 sm:$0xff]  }
  0x6c   : > { %2688 = vmatprep.subr.bf16.mxu0 %v5067_v37  ;;  %2934 = vmatprep.subr.bf16.mxu1 %v5070_v38  ;;  %v5162_v37 = vld [vmem:[%s7240_s1 + $0x4ec] ss:$16 sps:$4 sm:$0xff]   ;;  %v5157_v38 = vld [vmem:[%s7240_s1 + $0x4e0] ss:$16 sps:$4 sm:$0xff]  }
  0x6f   : > { %2689 = vmatpush1.bf16.msra.mxu0 %v5065_v39  ;;  %2935 = vmatpush1.bf16.msra.mxu1 %v5068_v40  ;;  %v5160_v39 = vld [vmem:[%s7240_s1 + $0x4e8] ss:$16 sps:$4 sm:$0xff]   ;;  %v5165_v40 = vld [vmem:[%s7240_s1 + $0x504] ss:$16 sps:$4 sm:$0xff]  }
  0x70   : > { %2690 = vmatprep.subr.bf16.mxu0 %v5073_v41  ;;  %2936 = vmatprep.subr.bf16.mxu1 %v5076_v42  ;;  %v5168_v41 = vld [vmem:[%s7240_s1 + $0x50c] ss:$16 sps:$4 sm:$0xff]   ;;  %v5163_v42 = vld [vmem:[%s7240_s1 + $0x500] ss:$16 sps:$4 sm:$0xff]  }
  0x73   : > { %2691 = vmatpush1.bf16.msra.mxu0 %v5071_v43  ;;  %2937 = vmatpush1.bf16.msra.mxu1 %v5074_v44  ;;  %v5166_v43 = vld [vmem:[%s7240_s1 + $0x508] ss:$16 sps:$4 sm:$0xff]   ;;  %v5171_v44 = vld [vmem:[%s7240_s1 + $0x524] ss:$16 sps:$4 sm:$0xff]  }
  0x74   : > { %2692 = vmatprep.subr.bf16.mxu0 %v5079_v45  ;;  %2938 = vmatprep.subr.bf16.mxu1 %v5082_v46  ;;  %v5174_v45 = vld [vmem:[%s7240_s1 + $0x52c] ss:$16 sps:$4 sm:$0xff]   ;;  %v5169_v46 = vld [vmem:[%s7240_s1 + $0x520] ss:$16 sps:$4 sm:$0xff]  }
  0x77   : > { %2693 = vmatpush1.bf16.msra.mxu0 %v5077_v47  ;;  %2939 = vmatpush1.bf16.msra.mxu1 %v5080_v48  ;;  %v5172_v47 = vld [vmem:[%s7240_s1 + $0x528] ss:$16 sps:$4 sm:$0xff]   ;;  %v5177_v48 = vld [vmem:[%s7240_s1 + $0x544] ss:$16 sps:$4 sm:$0xff]  }
  0x78   : > { %2694 = vmatprep.subr.bf16.mxu0 %v5085_v49  ;;  %2940 = vmatprep.subr.bf16.mxu1 %v5088_v50  ;;  %v5180_v49 = vld [vmem:[%s7240_s1 + $0x54c] ss:$16 sps:$4 sm:$0xff]   ;;  %v5175_v50 = vld [vmem:[%s7240_s1 + $0x540] ss:$16 sps:$4 sm:$0xff]  }
  0x7b   : > { %2695 = vmatpush1.bf16.msra.mxu0 %v5083_v51  ;;  %2941 = vmatpush1.bf16.msra.mxu1 %v5086_v52  ;;  %v5178_v51 = vld [vmem:[%s7240_s1 + $0x548] ss:$16 sps:$4 sm:$0xff]   ;;  %v5183_v52 = vld [vmem:[%s7240_s1 + $0x564] ss:$16 sps:$4 sm:$0xff]  }
  0x7c   : > { %2696 = vmatprep.subr.bf16.mxu0 %v5091_v53  ;;  %2942 = vmatprep.subr.bf16.mxu1 %v5094_v54  ;;  %v5186_v53 = vld [vmem:[%s7240_s1 + $0x56c] ss:$16 sps:$4 sm:$0xff]   ;;  %v5181_v54 = vld [vmem:[%s7240_s1 + $0x560] ss:$16 sps:$4 sm:$0xff]  }
  0x7f   : > { %2697 = vmatpush1.bf16.msra.mxu0 %v5089_v55  ;;  %2943 = vmatpush1.bf16.msra.mxu1 %v5092_v56  ;;  %v5184_v55 = vld [vmem:[%s7240_s1 + $0x568] ss:$16 sps:$4 sm:$0xff]   ;;  %v5189_v56 = vld [vmem:[%s7240_s1 + $0x584] ss:$16 sps:$4 sm:$0xff]  }
  0x80   : > { %2698 = vmatprep.subr.bf16.mxu0 %v5097_v57  ;;  %2944 = vmatprep.subr.bf16.mxu1 %v5100_v58  ;;  %v5192_v57 = vld [vmem:[%s7240_s1 + $0x58c] ss:$16 sps:$4 sm:$0xff]   ;;  %v5187_v58 = vld [vmem:[%s7240_s1 + $0x580] ss:$16 sps:$4 sm:$0xff]  }
  0x83   : > { %2699 = vmatpush1.bf16.msra.mxu0 %v5095_v59  ;;  %2945 = vmatpush1.bf16.msra.mxu1 %v5098_v60  ;;  %v5190_v59 = vld [vmem:[%s7240_s1 + $0x588] ss:$16 sps:$4 sm:$0xff]   ;;  %v5195_v60 = vld [vmem:[%s7240_s1 + $0x5a4] ss:$16 sps:$4 sm:$0xff]  }
  0x84   : > { %2700 = vmatprep.subr.bf16.mxu0 %v5103_v61  ;;  %2946 = vmatprep.subr.bf16.mxu1 %v5106_v62  ;;  %v5198_v61 = vld [vmem:[%s7240_s1 + $0x5ac] ss:$16 sps:$4 sm:$0xff]   ;;  %v5193_v62 = vld [vmem:[%s7240_s1 + $0x5a0] ss:$16 sps:$4 sm:$0xff]  }
  0x87   : > { %2701 = vmatpush1.bf16.msra.mxu0 %v5101_v63  ;;  %2947 = vmatpush1.bf16.msra.mxu1 %v5104_v0  ;;  %v5196_v63 = vld [vmem:[%s7240_s1 + $0x5a8] ss:$16 sps:$4 sm:$0xff]   ;;  %v5201_v0 = vld [vmem:[%s7240_s1 + $0x5c4] ss:$16 sps:$4 sm:$0xff]  }
  0x88   : > { %2702 = vmatprep.subr.bf16.mxu0 %v5109_v1  ;;  %2948 = vmatprep.subr.bf16.mxu1 %v5112_v2  ;;  %v5204_v1 = vld [vmem:[%s7240_s1 + $0x5cc] ss:$16 sps:$4 sm:$0xff]   ;;  %v5199_v2 = vld [vmem:[%s7240_s1 + $0x5c0] ss:$16 sps:$4 sm:$0xff]  }
  0x8b   : > { %2703 = vmatpush1.bf16.msra.mxu0 %v5107_v3  ;;  %2949 = vmatpush1.bf16.msra.mxu1 %v5110_v4  ;;  %v5202_v3 = vld [vmem:[%s7240_s1 + $0x5c8] ss:$16 sps:$4 sm:$0xff]   ;;  %v5207_v4 = vld [vmem:[%s7240_s1 + $0x5e4] ss:$16 sps:$4 sm:$0xff]  }
  0x8c   : > { %2713 = vmatprep.subr.bf16.mxu0 %v5117_v5  ;;  %2959 = vmatprep.subr.bf16.mxu1 %v5120_v6  ;;  %v5210_v5 = vld [vmem:[%s7240_s1 + $0x5ec] ss:$16 sps:$4 sm:$0xff]   ;;  %v5205_v6 = vld [vmem:[%s7240_s1 + $0x5e0] ss:$16 sps:$4 sm:$0xff]  }
  0x8e   : > { %2705 = vmatmul.mubr.bf16.vlgmr.msra.gmra.mrb[0].mxu0 %v4163_v7  ;;  %2951 = vmatmul.mubr.bf16.vlgmr.msra.gmra.mrb[0].mxu1 %v4163_v7  ;;  %v5208_v7 = vld [vmem:[%s7240_s1 + $0x5e8] ss:$16 sps:$4 sm:$0xff]  }
  0x8f   : > { %2714 = vmatpush1.bf16.msra.mxu0 %v5115_v8  ;;  %2960 = vmatpush1.bf16.msra.mxu1 %v5118_v9  ;;  %v5215_v8 = vld [vmem:[%s7240_s1 + $0x604] ss:$16 sps:$4 sm:$0xff]   ;;  %v5218_v9 = vld [vmem:[%s7240_s1 + $0x60c] ss:$16 sps:$4 sm:$0xff]  }
  0x90   : > { %2715 = vmatprep.subr.bf16.mxu0 %v5123_v10  ;;  %2961 = vmatprep.subr.bf16.mxu1 %v5126_v12  ;;  %v5213_v10 = vld [vmem:[%s7240_s1 + $0x600] ss:$16 sps:$4 sm:$0xff]   ;;  %v4165_v12 = vcombine.low %v5987_v11, %v5987_v11 }
  0x91   : > { %2745 = vmatprep.mubr.bf16.mxu0 %v4166_v13  ;;  %2991 = vmatprep.mubr.bf16.mxu1 %v4166_v13  ;;  %v5216_v13 = vld [vmem:[%s7240_s1 + $0x608] ss:$16 sps:$4 sm:$0xff]  }
  0x93   : > { %2716 = vmatpush1.bf16.msra.mxu0 %v5121_v14  ;;  %2962 = vmatpush1.bf16.msra.mxu1 %v5124_v15  ;;  %v6183_v14 = vld [vmem:[%s5709_s10 + $0x18] sm:$0xff]  ;;  %v5221_v15 = vld [vmem:[%s7240_s1 + $0x624] ss:$16 sps:$4 sm:$0xff]  }
  0x94   : > { %2717 = vmatprep.subr.bf16.mxu0 %v5129_v16  ;;  %2963 = vmatprep.subr.bf16.mxu1 %v5132_v17  ;;  %v5224_v16 = vld [vmem:[%s7240_s1 + $0x62c] ss:$16 sps:$4 sm:$0xff]   ;;  %v4168_v11 = vcombine.high %v6183_v14, %v6183_v14  ;;  %v5219_v17 = vld [vmem:[%s7240_s1 + $0x620] ss:$16 sps:$4 sm:$0xff]  }
  0x97   : > { %2718 = vmatpush1.bf16.msra.mxu0 %v5127_v18  ;;  %2964 = vmatpush1.bf16.msra.mxu1 %v5130_v19  ;;  %v5222_v18 = vld [vmem:[%s7240_s1 + $0x628] ss:$16 sps:$4 sm:$0xff]   ;;  %v5227_v19 = vld [vmem:[%s7240_s1 + $0x644] ss:$16 sps:$4 sm:$0xff]  }
  0x98   : > { %2719 = vmatprep.subr.bf16.mxu0 %v5135_v20  ;;  %2965 = vmatprep.subr.bf16.mxu1 %v5138_v21  ;;  %v5230_v20 = vld [vmem:[%s7240_s1 + $0x64c] ss:$16 sps:$4 sm:$0xff]   ;;  %v5225_v21 = vld [vmem:[%s7240_s1 + $0x640] ss:$16 sps:$4 sm:$0xff]  }
  0x9b   : > { %2720 = vmatpush1.bf16.msra.mxu0 %v5133_v22  ;;  %2966 = vmatpush1.bf16.msra.mxu1 %v5136_v23  ;;  %v5228_v22 = vld [vmem:[%s7240_s1 + $0x648] ss:$16 sps:$4 sm:$0xff]   ;;  %v5233_v23 = vld [vmem:[%s7240_s1 + $0x664] ss:$16 sps:$4 sm:$0xff]  }
  0x9c   : > { %2721 = vmatprep.subr.bf16.mxu0 %v5141_v24  ;;  %2967 = vmatprep.subr.bf16.mxu1 %v5144_v25  ;;  %v5236_v24 = vld [vmem:[%s7240_s1 + $0x66c] ss:$16 sps:$4 sm:$0xff]   ;;  %v5231_v25 = vld [vmem:[%s7240_s1 + $0x660] ss:$16 sps:$4 sm:$0xff]  }
  0x9f   : > { %2722 = vmatpush1.bf16.msra.mxu0 %v5139_v26  ;;  %2968 = vmatpush1.bf16.msra.mxu1 %v5142_v27  ;;  %v5234_v26 = vld [vmem:[%s7240_s1 + $0x668] ss:$16 sps:$4 sm:$0xff]   ;;  %v5239_v27 = vld [vmem:[%s7240_s1 + $0x684] ss:$16 sps:$4 sm:$0xff]  }
  0xa0   : > { %2723 = vmatprep.subr.bf16.mxu0 %v5147_v28  ;;  %2969 = vmatprep.subr.bf16.mxu1 %v5150_v29  ;;  %v5242_v28 = vld [vmem:[%s7240_s1 + $0x68c] ss:$16 sps:$4 sm:$0xff]   ;;  %v5237_v29 = vld [vmem:[%s7240_s1 + $0x680] ss:$16 sps:$4 sm:$0xff]  }
  0xa3   : > { %2724 = vmatpush1.bf16.msra.mxu0 %v5145_v30  ;;  %2970 = vmatpush1.bf16.msra.mxu1 %v5148_v31  ;;  %v5240_v30 = vld [vmem:[%s7240_s1 + $0x688] ss:$16 sps:$4 sm:$0xff]   ;;  %v5245_v31 = vld [vmem:[%s7240_s1 + $0x6a4] ss:$16 sps:$4 sm:$0xff]  }
  0xa4   : > { %2725 = vmatprep.subr.bf16.mxu0 %v5153_v32  ;;  %2971 = vmatprep.subr.bf16.mxu1 %v5156_v33  ;;  %v5248_v32 = vld [vmem:[%s7240_s1 + $0x6ac] ss:$16 sps:$4 sm:$0xff]   ;;  %v5243_v33 = vld [vmem:[%s7240_s1 + $0x6a0] ss:$16 sps:$4 sm:$0xff]  }
  0xa7   : > { %2726 = vmatpush1.bf16.msra.mxu0 %v5151_v34  ;;  %2972 = vmatpush1.bf16.msra.mxu1 %v5154_v35  ;;  %v5246_v34 = vld [vmem:[%s7240_s1 + $0x6a8] ss:$16 sps:$4 sm:$0xff]   ;;  %v5251_v35 = vld [vmem:[%s7240_s1 + $0x6c4] ss:$16 sps:$4 sm:$0xff]  }
  0xa8   : > { %2727 = vmatprep.subr.bf16.mxu0 %v5159_v36  ;;  %2973 = vmatprep.subr.bf16.mxu1 %v5162_v37  ;;  %v5254_v36 = vld [vmem:[%s7240_s1 + $0x6cc] ss:$16 sps:$4 sm:$0xff]   ;;  %v5249_v37 = vld [vmem:[%s7240_s1 + $0x6c0] ss:$16 sps:$4 sm:$0xff]  }
  0xab   : > { %2728 = vmatpush1.bf16.msra.mxu0 %v5157_v38  ;;  %2974 = vmatpush1.bf16.msra.mxu1 %v5160_v39  ;;  %v5252_v38 = vld [vmem:[%s7240_s1 + $0x6c8] ss:$16 sps:$4 sm:$0xff]   ;;  %v5257_v39 = vld [vmem:[%s7240_s1 + $0x6e4] ss:$16 sps:$4 sm:$0xff]  }
  0xac   : > { %2729 = vmatprep.subr.bf16.mxu0 %v5165_v40  ;;  %2975 = vmatprep.subr.bf16.mxu1 %v5168_v41  ;;  %v5260_v40 = vld [vmem:[%s7240_s1 + $0x6ec] ss:$16 sps:$4 sm:$0xff]   ;;  %v5255_v41 = vld [vmem:[%s7240_s1 + $0x6e0] ss:$16 sps:$4 sm:$0xff]  }
  0xaf   : > { %2730 = vmatpush1.bf16.msra.mxu0 %v5163_v42  ;;  %2976 = vmatpush1.bf16.msra.mxu1 %v5166_v43  ;;  %v5258_v42 = vld [vmem:[%s7240_s1 + $0x6e8] ss:$16 sps:$4 sm:$0xff]   ;;  %v5263_v43 = vld [vmem:[%s7240_s1 + $0x704] ss:$16 sps:$4 sm:$0xff]  }
  0xb0   : > { %2731 = vmatprep.subr.bf16.mxu0 %v5171_v44  ;;  %2977 = vmatprep.subr.bf16.mxu1 %v5174_v45  ;;  %v5266_v44 = vld [vmem:[%s7240_s1 + $0x70c] ss:$16 sps:$4 sm:$0xff]   ;;  %v5261_v45 = vld [vmem:[%s7240_s1 + $0x700] ss:$16 sps:$4 sm:$0xff]  }
  0xb3   : > { %2732 = vmatpush1.bf16.msra.mxu0 %v5169_v46  ;;  %2978 = vmatpush1.bf16.msra.mxu1 %v5172_v47  ;;  %v5264_v46 = vld [vmem:[%s7240_s1 + $0x708] ss:$16 sps:$4 sm:$0xff]   ;;  %v5269_v47 = vld [vmem:[%s7240_s1 + $0x724] ss:$16 sps:$4 sm:$0xff]  }
  0xb4   : > { %2733 = vmatprep.subr.bf16.mxu0 %v5177_v48  ;;  %2979 = vmatprep.subr.bf16.mxu1 %v5180_v49  ;;  %v5272_v48 = vld [vmem:[%s7240_s1 + $0x72c] ss:$16 sps:$4 sm:$0xff]   ;;  %v5267_v49 = vld [vmem:[%s7240_s1 + $0x720] ss:$16 sps:$4 sm:$0xff]  }
  0xb7   : > { %2734 = vmatpush1.bf16.msra.mxu0 %v5175_v50  ;;  %2980 = vmatpush1.bf16.msra.mxu1 %v5178_v51  ;;  %v5270_v50 = vld [vmem:[%s7240_s1 + $0x728] ss:$16 sps:$4 sm:$0xff]   ;;  %v5275_v51 = vld [vmem:[%s7240_s1 + $0x744] ss:$16 sps:$4 sm:$0xff]  }
  0xb8   : > { %2735 = vmatprep.subr.bf16.mxu0 %v5183_v52  ;;  %2981 = vmatprep.subr.bf16.mxu1 %v5186_v53  ;;  %v5278_v52 = vld [vmem:[%s7240_s1 + $0x74c] ss:$16 sps:$4 sm:$0xff]   ;;  %v5273_v53 = vld [vmem:[%s7240_s1 + $0x740] ss:$16 sps:$4 sm:$0xff]  }
  0xbb   : > { %2736 = vmatpush1.bf16.msra.mxu0 %v5181_v54  ;;  %2982 = vmatpush1.bf16.msra.mxu1 %v5184_v55  ;;  %v5276_v54 = vld [vmem:[%s7240_s1 + $0x748] ss:$16 sps:$4 sm:$0xff]   ;;  %v5281_v55 = vld [vmem:[%s7240_s1 + $0x764] ss:$16 sps:$4 sm:$0xff]  }
  0xbc   : > { %2737 = vmatprep.subr.bf16.mxu0 %v5189_v56  ;;  %2983 = vmatprep.subr.bf16.mxu1 %v5192_v57  ;;  %v5284_v56 = vld [vmem:[%s7240_s1 + $0x76c] ss:$16 sps:$4 sm:$0xff]   ;;  %v5279_v57 = vld [vmem:[%s7240_s1 + $0x760] ss:$16 sps:$4 sm:$0xff]  }
  0xbf   : > { %2738 = vmatpush1.bf16.msra.mxu0 %v5187_v58  ;;  %2984 = vmatpush1.bf16.msra.mxu1 %v5190_v59  ;;  %v5282_v58 = vld [vmem:[%s7240_s1 + $0x768] ss:$16 sps:$4 sm:$0xff]   ;;  %v5287_v59 = vld [vmem:[%s7240_s1 + $0x784] ss:$16 sps:$4 sm:$0xff]  }
  0xc0   : > { %2739 = vmatprep.subr.bf16.mxu0 %v5195_v60  ;;  %2985 = vmatprep.subr.bf16.mxu1 %v5198_v61  ;;  %v5290_v60 = vld [vmem:[%s7240_s1 + $0x78c] ss:$16 sps:$4 sm:$0xff]   ;;  %v5285_v61 = vld [vmem:[%s7240_s1 + $0x780] ss:$16 sps:$4 sm:$0xff]  }
  0xc3   : > { %2740 = vmatpush1.bf16.msra.mxu0 %v5193_v62  ;;  %2986 = vmatpush1.bf16.msra.mxu1 %v5196_v63  ;;  %v5288_v62 = vld [vmem:[%s7240_s1 + $0x788] ss:$16 sps:$4 sm:$0xff]   ;;  %v5293_v63 = vld [vmem:[%s7240_s1 + $0x7a4] ss:$16 sps:$4 sm:$0xff]  }
  0xc4   : > { %2741 = vmatprep.subr.bf16.mxu0 %v5201_v0  ;;  %2987 = vmatprep.subr.bf16.mxu1 %v5204_v1  ;;  %v5296_v0 = vld [vmem:[%s7240_s1 + $0x7ac] ss:$16 sps:$4 sm:$0xff]   ;;  %v5291_v1 = vld [vmem:[%s7240_s1 + $0x7a0] ss:$16 sps:$4 sm:$0xff]  }
  0xc7   : > { %2742 = vmatpush1.bf16.msra.mxu0 %v5199_v2  ;;  %2988 = vmatpush1.bf16.msra.mxu1 %v5202_v3  ;;  %v5294_v2 = vld [vmem:[%s7240_s1 + $0x7a8] ss:$16 sps:$4 sm:$0xff]   ;;  %v5299_v3 = vld [vmem:[%s7240_s1 + $0x7c4] ss:$16 sps:$4 sm:$0xff]  }
  0xc8   : > { %2743 = vmatprep.subr.bf16.mxu0 %v5207_v4  ;;  %2989 = vmatprep.subr.bf16.mxu1 %v5210_v5  ;;  %v5302_v4 = vld [vmem:[%s7240_s1 + $0x7cc] ss:$16 sps:$4 sm:$0xff]   ;;  %v5297_v5 = vld [vmem:[%s7240_s1 + $0x7c0] ss:$16 sps:$4 sm:$0xff]  }
  0xcb   : > { %2744 = vmatpush1.bf16.msra.mxu0 %v5205_v6  ;;  %2990 = vmatpush1.bf16.msra.mxu1 %v5208_v7  ;;  %v5300_v6 = vld [vmem:[%s7240_s1 + $0x7c8] ss:$16 sps:$4 sm:$0xff]   ;;  %v5305_v7 = vld [vmem:[%s7240_s1 + $0x7e4] ss:$16 sps:$4 sm:$0xff]  }
  0xcc   : > { %2754 = vmatprep.subr.bf16.mxu0 %v5215_v8  ;;  %3000 = vmatprep.subr.bf16.mxu1 %v5218_v9  ;;  %v5308_v8 = vld [vmem:[%s7240_s1 + $0x7ec] ss:$16 sps:$4 sm:$0xff]   ;;  %v5303_v9 = vld [vmem:[%s7240_s1 + $0x7e0] ss:$16 sps:$4 sm:$0xff]  }
  0xce   : > { %2746 = vmatmul.mubr.bf16.vlgmr.msra.gmra.mrb[0].mxu0 %v4165_v12  ;;  %2992 = vmatmul.mubr.bf16.vlgmr.msra.gmra.mrb[0].mxu1 %v4165_v12  ;;  %v5313_v12 = vld [vmem:[%s7240_s1 + $0x804] ss:$16 sps:$4 sm:$0xff]  }
  0xcf   : > { %2755 = vmatpush1.bf16.msra.mxu0 %v5213_v10  ;;  %3001 = vmatpush1.bf16.msra.mxu1 %v5216_v13  ;;  %v5306_v10 = vld [vmem:[%s7240_s1 + $0x7e8] ss:$16 sps:$4 sm:$0xff]   ;;  %v5316_v13 = vld [vmem:[%s7240_s1 + $0x80c] ss:$16 sps:$4 sm:$0xff]  }
  0xd0   : > { %2756 = vmatprep.subr.bf16.mxu0 %v5221_v15  ;;  %3002 = vmatprep.subr.bf16.mxu1 %v5224_v16  ;;  %v5311_v15 = vld [vmem:[%s7240_s1 + $0x800] ss:$16 sps:$4 sm:$0xff]   ;;  %v4167_v16 = vcombine.low %v6183_v14, %v6183_v14 }
  0xd1   : > { %2786 = vmatprep.mubr.bf16.mxu0 %v4168_v11  ;;  %3032 = vmatprep.mubr.bf16.mxu1 %v4168_v11  ;;  %v6379_v11 = vld [vmem:[%s5709_s10 + $0x20] sm:$0xff] }
  0xd2   : > { %v4170_v14 = vcombine.high %v6379_v11, %v6379_v11 }
  0xd3   : > { %2757 = vmatpush1.bf16.msra.mxu0 %v5219_v17  ;;  %3003 = vmatpush1.bf16.msra.mxu1 %v5222_v18  ;;  %v5314_v17 = vld [vmem:[%s7240_s1 + $0x808] ss:$16 sps:$4 sm:$0xff]   ;;  %v5319_v18 = vld [vmem:[%s7240_s1 + $0x824] ss:$16 sps:$4 sm:$0xff]  }
  0xd4   : > { %2758 = vmatprep.subr.bf16.mxu0 %v5227_v19  ;;  %3004 = vmatprep.subr.bf16.mxu1 %v5230_v20  ;;  %v5322_v19 = vld [vmem:[%s7240_s1 + $0x82c] ss:$16 sps:$4 sm:$0xff]   ;;  %v5317_v20 = vld [vmem:[%s7240_s1 + $0x820] ss:$16 sps:$4 sm:$0xff]  }
  0xd7   : > { %2759 = vmatpush1.bf16.msra.mxu0 %v5225_v21  ;;  %3005 = vmatpush1.bf16.msra.mxu1 %v5228_v22  ;;  %v5320_v21 = vld [vmem:[%s7240_s1 + $0x828] ss:$16 sps:$4 sm:$0xff]   ;;  %v5325_v22 = vld [vmem:[%s7240_s1 + $0x844] ss:$16 sps:$4 sm:$0xff]  }
  0xd8   : > { %2760 = vmatprep.subr.bf16.mxu0 %v5233_v23  ;;  %3006 = vmatprep.subr.bf16.mxu1 %v5236_v24  ;;  %v5328_v23 = vld [vmem:[%s7240_s1 + $0x84c] ss:$16 sps:$4 sm:$0xff]   ;;  %v5323_v24 = vld [vmem:[%s7240_s1 + $0x840] ss:$16 sps:$4 sm:$0xff]  }
  0xdb   : > { %2761 = vmatpush1.bf16.msra.mxu0 %v5231_v25  ;;  %3007 = vmatpush1.bf16.msra.mxu1 %v5234_v26  ;;  %v5326_v25 = vld [vmem:[%s7240_s1 + $0x848] ss:$16 sps:$4 sm:$0xff]   ;;  %v5331_v26 = vld [vmem:[%s7240_s1 + $0x864] ss:$16 sps:$4 sm:$0xff]  }
  0xdc   : > { %2762 = vmatprep.subr.bf16.mxu0 %v5239_v27  ;;  %3008 = vmatprep.subr.bf16.mxu1 %v5242_v28  ;;  %v5334_v27 = vld [vmem:[%s7240_s1 + $0x86c] ss:$16 sps:$4 sm:$0xff]   ;;  %v5329_v28 = vld [vmem:[%s7240_s1 + $0x860] ss:$16 sps:$4 sm:$0xff]  }
  0xdf   : > { %2763 = vmatpush1.bf16.msra.mxu0 %v5237_v29  ;;  %3009 = vmatpush1.bf16.msra.mxu1 %v5240_v30  ;;  %v5332_v29 = vld [vmem:[%s7240_s1 + $0x868] ss:$16 sps:$4 sm:$0xff]   ;;  %v5337_v30 = vld [vmem:[%s7240_s1 + $0x884] ss:$16 sps:$4 sm:$0xff]  }
  0xe0   : > { %2764 = vmatprep.subr.bf16.mxu0 %v5245_v31  ;;  %3010 = vmatprep.subr.bf16.mxu1 %v5248_v32  ;;  %v5340_v31 = vld [vmem:[%s7240_s1 + $0x88c] ss:$16 sps:$4 sm:$0xff]   ;;  %v5335_v32 = vld [vmem:[%s7240_s1 + $0x880] ss:$16 sps:$4 sm:$0xff]  }
  0xe3   : > { %2765 = vmatpush1.bf16.msra.mxu0 %v5243_v33  ;;  %3011 = vmatpush1.bf16.msra.mxu1 %v5246_v34  ;;  %v5338_v33 = vld [vmem:[%s7240_s1 + $0x888] ss:$16 sps:$4 sm:$0xff]   ;;  %v5343_v34 = vld [vmem:[%s7240_s1 + $0x8a4] ss:$16 sps:$4 sm:$0xff]  }
  0xe4   : > { %2766 = vmatprep.subr.bf16.mxu0 %v5251_v35  ;;  %3012 = vmatprep.subr.bf16.mxu1 %v5254_v36  ;;  %v5346_v35 = vld [vmem:[%s7240_s1 + $0x8ac] ss:$16 sps:$4 sm:$0xff]   ;;  %v5341_v36 = vld [vmem:[%s7240_s1 + $0x8a0] ss:$16 sps:$4 sm:$0xff]  }
  0xe7   : > { %2767 = vmatpush1.bf16.msra.mxu0 %v5249_v37  ;;  %3013 = vmatpush1.bf16.msra.mxu1 %v5252_v38  ;;  %v5344_v37 = vld [vmem:[%s7240_s1 + $0x8a8] ss:$16 sps:$4 sm:$0xff]   ;;  %v5349_v38 = vld [vmem:[%s7240_s1 + $0x8c4] ss:$16 sps:$4 sm:$0xff]  }
  0xe8   : > { %2768 = vmatprep.subr.bf16.mxu0 %v5257_v39  ;;  %3014 = vmatprep.subr.bf16.mxu1 %v5260_v40  ;;  %v5352_v39 = vld [vmem:[%s7240_s1 + $0x8cc] ss:$16 sps:$4 sm:$0xff]   ;;  %v5347_v40 = vld [vmem:[%s7240_s1 + $0x8c0] ss:$16 sps:$4 sm:$0xff]  }
  0xeb   : > { %2769 = vmatpush1.bf16.msra.mxu0 %v5255_v41  ;;  %3015 = vmatpush1.bf16.msra.mxu1 %v5258_v42  ;;  %v5350_v41 = vld [vmem:[%s7240_s1 + $0x8c8] ss:$16 sps:$4 sm:$0xff]   ;;  %v5355_v42 = vld [vmem:[%s7240_s1 + $0x8e4] ss:$16 sps:$4 sm:$0xff]  }
  0xec   : > { %2770 = vmatprep.subr.bf16.mxu0 %v5263_v43  ;;  %3016 = vmatprep.subr.bf16.mxu1 %v5266_v44  ;;  %v5358_v43 = vld [vmem:[%s7240_s1 + $0x8ec] ss:$16 sps:$4 sm:$0xff]   ;;  %v5353_v44 = vld [vmem:[%s7240_s1 + $0x8e0] ss:$16 sps:$4 sm:$0xff]  }
  0xef   : > { %2771 = vmatpush1.bf16.msra.mxu0 %v5261_v45  ;;  %3017 = vmatpush1.bf16.msra.mxu1 %v5264_v46  ;;  %v5356_v45 = vld [vmem:[%s7240_s1 + $0x8e8] ss:$16 sps:$4 sm:$0xff]   ;;  %v5361_v46 = vld [vmem:[%s7240_s1 + $0x904] ss:$16 sps:$4 sm:$0xff]  }
  0xf0   : > { %2772 = vmatprep.subr.bf16.mxu0 %v5269_v47  ;;  %3018 = vmatprep.subr.bf16.mxu1 %v5272_v48  ;;  %v5364_v47 = vld [vmem:[%s7240_s1 + $0x90c] ss:$16 sps:$4 sm:$0xff]   ;;  %v5359_v48 = vld [vmem:[%s7240_s1 + $0x900] ss:$16 sps:$4 sm:$0xff]  }
  0xf3   : > { %2773 = vmatpush1.bf16.msra.mxu0 %v5267_v49  ;;  %3019 = vmatpush1.bf16.msra.mxu1 %v5270_v50  ;;  %v5362_v49 = vld [vmem:[%s7240_s1 + $0x908] ss:$16 sps:$4 sm:$0xff]   ;;  %v5367_v50 = vld [vmem:[%s7240_s1 + $0x924] ss:$16 sps:$4 sm:$0xff]  }
  0xf4   : > { %2774 = vmatprep.subr.bf16.mxu0 %v5275_v51  ;;  %3020 = vmatprep.subr.bf16.mxu1 %v5278_v52  ;;  %v5370_v51 = vld [vmem:[%s7240_s1 + $0x92c] ss:$16 sps:$4 sm:$0xff]   ;;  %v5365_v52 = vld [vmem:[%s7240_s1 + $0x920] ss:$16 sps:$4 sm:$0xff]  }
  0xf7   : > { %2775 = vmatpush1.bf16.msra.mxu0 %v5273_v53  ;;  %3021 = vmatpush1.bf16.msra.mxu1 %v5276_v54  ;;  %v5368_v53 = vld [vmem:[%s7240_s1 + $0x928] ss:$16 sps:$4 sm:$0xff]   ;;  %v5373_v54 = vld [vmem:[%s7240_s1 + $0x944] ss:$16 sps:$4 sm:$0xff]  }
  0xf8   : > { %2776 = vmatprep.subr.bf16.mxu0 %v5281_v55  ;;  %3022 = vmatprep.subr.bf16.mxu1 %v5284_v56  ;;  %v5376_v55 = vld [vmem:[%s7240_s1 + $0x94c] ss:$16 sps:$4 sm:$0xff]   ;;  %v5371_v56 = vld [vmem:[%s7240_s1 + $0x940] ss:$16 sps:$4 sm:$0xff]  }
  0xfb   : > { %2777 = vmatpush1.bf16.msra.mxu0 %v5279_v57  ;;  %3023 = vmatpush1.bf16.msra.mxu1 %v5282_v58  ;;  %v5374_v57 = vld [vmem:[%s7240_s1 + $0x948] ss:$16 sps:$4 sm:$0xff]   ;;  %v5379_v58 = vld [vmem:[%s7240_s1 + $0x964] ss:$16 sps:$4 sm:$0xff]  }
  0xfc   : > { %2778 = vmatprep.subr.bf16.mxu0 %v5287_v59  ;;  %3024 = vmatprep.subr.bf16.mxu1 %v5290_v60  ;;  %v5382_v59 = vld [vmem:[%s7240_s1 + $0x96c] ss:$16 sps:$4 sm:$0xff]   ;;  %v5377_v60 = vld [vmem:[%s7240_s1 + $0x960] ss:$16 sps:$4 sm:$0xff]  }
  0xff   : > { %2779 = vmatpush1.bf16.msra.mxu0 %v5285_v61  ;;  %3025 = vmatpush1.bf16.msra.mxu1 %v5288_v62  ;;  %v5380_v61 = vld [vmem:[%s7240_s1 + $0x968] ss:$16 sps:$4 sm:$0xff]   ;;  %v5385_v62 = vld [vmem:[%s7240_s1 + $0x984] ss:$16 sps:$4 sm:$0xff]  }
 0x100   : > { %2780 = vmatprep.subr.bf16.mxu0 %v5293_v63  ;;  %3026 = vmatprep.subr.bf16.mxu1 %v5296_v0  ;;  %v5388_v63 = vld [vmem:[%s7240_s1 + $0x98c] ss:$16 sps:$4 sm:$0xff]   ;;  %v5383_v0 = vld [vmem:[%s7240_s1 + $0x980] ss:$16 sps:$4 sm:$0xff]  }
 0x103   : > { %2781 = vmatpush1.bf16.msra.mxu0 %v5291_v1  ;;  %3027 = vmatpush1.bf16.msra.mxu1 %v5294_v2  ;;  %v5386_v1 = vld [vmem:[%s7240_s1 + $0x988] ss:$16 sps:$4 sm:$0xff]   ;;  %v5391_v2 = vld [vmem:[%s7240_s1 + $0x9a4] ss:$16 sps:$4 sm:$0xff]  }
 0x104   : > { %2782 = vmatprep.subr.bf16.mxu0 %v5299_v3  ;;  %3028 = vmatprep.subr.bf16.mxu1 %v5302_v4  ;;  %v5394_v3 = vld [vmem:[%s7240_s1 + $0x9ac] ss:$16 sps:$4 sm:$0xff]   ;;  %v5389_v4 = vld [vmem:[%s7240_s1 + $0x9a0] ss:$16 sps:$4 sm:$0xff]  }
 0x107   : > { %2783 = vmatpush1.bf16.msra.mxu0 %v5297_v5  ;;  %3029 = vmatpush1.bf16.msra.mxu1 %v5300_v6  ;;  %v5392_v5 = vld [vmem:[%s7240_s1 + $0x9a8] ss:$16 sps:$4 sm:$0xff]   ;;  %v5397_v6 = vld [vmem:[%s7240_s1 + $0x9c4] ss:$16 sps:$4 sm:$0xff]  }
 0x108   : > { %2784 = vmatprep.subr.bf16.mxu0 %v5305_v7  ;;  %3030 = vmatprep.subr.bf16.mxu1 %v5308_v8  ;;  %v5400_v7 = vld [vmem:[%s7240_s1 + $0x9cc] ss:$16 sps:$4 sm:$0xff]   ;;  %v5395_v8 = vld [vmem:[%s7240_s1 + $0x9c0] ss:$16 sps:$4 sm:$0xff]  }
 0x10b   : > { %2785 = vmatpush1.bf16.msra.mxu0 %v5303_v9  ;;  %3031 = vmatpush1.bf16.msra.mxu1 %v5306_v10  ;;  %v5398_v9 = vld [vmem:[%s7240_s1 + $0x9c8] ss:$16 sps:$4 sm:$0xff]   ;;  %v5403_v10 = vld [vmem:[%s7240_s1 + $0x9e4] ss:$16 sps:$4 sm:$0xff]  }
 0x10c   : > { %2795 = vmatprep.subr.bf16.mxu0 %v5313_v12  ;;  %3041 = vmatprep.subr.bf16.mxu1 %v5316_v13  ;;  %v5406_v12 = vld [vmem:[%s7240_s1 + $0x9ec] ss:$16 sps:$4 sm:$0xff]   ;;  %v5401_v13 = vld [vmem:[%s7240_s1 + $0x9e0] ss:$16 sps:$4 sm:$0xff]  }
 0x10e   : > { %2787 = vmatmul.mubr.bf16.vlgmr.msra.gmra.mrb[0].mxu0 %v4167_v16  ;;  %3033 = vmatmul.mubr.bf16.vlgmr.msra.gmra.mrb[0].mxu1 %v4167_v16  ;;  %v5411_v16 = vld [vmem:[%s7240_s1 + $0xa04] ss:$16 sps:$4 sm:$0xff]  }
 0x10f   : > { %2796 = vmatpush1.bf16.msra.mxu0 %v5311_v15  ;;  %3042 = vmatpush1.bf16.msra.mxu1 %v5314_v17  ;;  %v5404_v15 = vld [vmem:[%s7240_s1 + $0x9e8] ss:$16 sps:$4 sm:$0xff]   ;;  %v5414_v17 = vld [vmem:[%s7240_s1 + $0xa0c] ss:$16 sps:$4 sm:$0xff]  }
 0x110   : > { %2797 = vmatprep.subr.bf16.mxu0 %v5319_v18  ;;  %3043 = vmatprep.subr.bf16.mxu1 %v5322_v19  ;;  %v4169_v18 = vcombine.low %v6379_v11, %v6379_v11  ;;  %v6575_v19 = vld [vmem:[%s5709_s10 + $0x28] sm:$0xff] }
 0x111   : > { %2827 = vmatprep.mubr.bf16.mxu0 %v4170_v14  ;;  %3073 = vmatprep.mubr.bf16.mxu1 %v4170_v14  ;;  %v5409_v14 = vld [vmem:[%s7240_s1 + $0xa00] ss:$16 sps:$4 sm:$0xff]   ;;  %v5420_v11 = vld [vmem:[%s7240_s1 + $0xa2c] ss:$16 sps:$4 sm:$0xff]  }
 0x113   : > { %2798 = vmatpush1.bf16.msra.mxu0 %v5317_v20  ;;  %3044 = vmatpush1.bf16.msra.mxu1 %v5320_v21  ;;  %v5412_v20 = vld [vmem:[%s7240_s1 + $0xa08] ss:$16 sps:$4 sm:$0xff]   ;;  %v5417_v21 = vld [vmem:[%s7240_s1 + $0xa24] ss:$16 sps:$4 sm:$0xff]  }
 0x114   : > { %2799 = vmatprep.subr.bf16.mxu0 %v5325_v22  ;;  %3045 = vmatprep.subr.bf16.mxu1 %v5328_v23  ;;  %v4172_v22 = vcombine.high %v6575_v19, %v6575_v19  ;;  %v5415_v23 = vld [vmem:[%s7240_s1 + $0xa20] ss:$16 sps:$4 sm:$0xff]  }
 0x117   : > { %2800 = vmatpush1.bf16.msra.mxu0 %v5323_v24  ;;  %3046 = vmatpush1.bf16.msra.mxu1 %v5326_v25  ;;  %v5418_v24 = vld [vmem:[%s7240_s1 + $0xa28] ss:$16 sps:$4 sm:$0xff]   ;;  %v5423_v25 = vld [vmem:[%s7240_s1 + $0xa44] ss:$16 sps:$4 sm:$0xff]  }
 0x118   : > { %2801 = vmatprep.subr.bf16.mxu0 %v5331_v26  ;;  %3047 = vmatprep.subr.bf16.mxu1 %v5334_v27  ;;  %v5426_v26 = vld [vmem:[%s7240_s1 + $0xa4c] ss:$16 sps:$4 sm:$0xff]   ;;  %v5421_v27 = vld [vmem:[%s7240_s1 + $0xa40] ss:$16 sps:$4 sm:$0xff]  }
 0x11b   : > { %2802 = vmatpush1.bf16.msra.mxu0 %v5329_v28  ;;  %3048 = vmatpush1.bf16.msra.mxu1 %v5332_v29  ;;  %v5424_v28 = vld [vmem:[%s7240_s1 + $0xa48] ss:$16 sps:$4 sm:$0xff]   ;;  %v5429_v29 = vld [vmem:[%s7240_s1 + $0xa64] ss:$16 sps:$4 sm:$0xff]  }
 0x11c   : > { %2803 = vmatprep.subr.bf16.mxu0 %v5337_v30  ;;  %3049 = vmatprep.subr.bf16.mxu1 %v5340_v31  ;;  %v5432_v30 = vld [vmem:[%s7240_s1 + $0xa6c] ss:$16 sps:$4 sm:$0xff]   ;;  %v5427_v31 = vld [vmem:[%s7240_s1 + $0xa60] ss:$16 sps:$4 sm:$0xff]  }
 0x11f   : > { %2804 = vmatpush1.bf16.msra.mxu0 %v5335_v32  ;;  %3050 = vmatpush1.bf16.msra.mxu1 %v5338_v33  ;;  %v5430_v32 = vld [vmem:[%s7240_s1 + $0xa68] ss:$16 sps:$4 sm:$0xff]   ;;  %v5435_v33 = vld [vmem:[%s7240_s1 + $0xa84] ss:$16 sps:$4 sm:$0xff]  }
 0x120   : > { %2805 = vmatprep.subr.bf16.mxu0 %v5343_v34  ;;  %3051 = vmatprep.subr.bf16.mxu1 %v5346_v35  ;;  %v5438_v34 = vld [vmem:[%s7240_s1 + $0xa8c] ss:$16 sps:$4 sm:$0xff]   ;;  %v5433_v35 = vld [vmem:[%s7240_s1 + $0xa80] ss:$16 sps:$4 sm:$0xff]  }
 0x123   : > { %2806 = vmatpush1.bf16.msra.mxu0 %v5341_v36  ;;  %3052 = vmatpush1.bf16.msra.mxu1 %v5344_v37  ;;  %v5436_v36 = vld [vmem:[%s7240_s1 + $0xa88] ss:$16 sps:$4 sm:$0xff]   ;;  %v5441_v37 = vld [vmem:[%s7240_s1 + $0xaa4] ss:$16 sps:$4 sm:$0xff]  }
 0x124   : > { %2807 = vmatprep.subr.bf16.mxu0 %v5349_v38  ;;  %3053 = vmatprep.subr.bf16.mxu1 %v5352_v39  ;;  %v5444_v38 = vld [vmem:[%s7240_s1 + $0xaac] ss:$16 sps:$4 sm:$0xff]   ;;  %v5439_v39 = vld [vmem:[%s7240_s1 + $0xaa0] ss:$16 sps:$4 sm:$0xff]  }
 0x127   : > { %2808 = vmatpush1.bf16.msra.mxu0 %v5347_v40  ;;  %3054 = vmatpush1.bf16.msra.mxu1 %v5350_v41  ;;  %v5442_v40 = vld [vmem:[%s7240_s1 + $0xaa8] ss:$16 sps:$4 sm:$0xff]   ;;  %v5447_v41 = vld [vmem:[%s7240_s1 + $0xac4] ss:$16 sps:$4 sm:$0xff]  }
 0x128   : > { %2809 = vmatprep.subr.bf16.mxu0 %v5355_v42  ;;  %3055 = vmatprep.subr.bf16.mxu1 %v5358_v43  ;;  %v5450_v42 = vld [vmem:[%s7240_s1 + $0xacc] ss:$16 sps:$4 sm:$0xff]   ;;  %v5445_v43 = vld [vmem:[%s7240_s1 + $0xac0] ss:$16 sps:$4 sm:$0xff]  }
 0x12b   : > { %2810 = vmatpush1.bf16.msra.mxu0 %v5353_v44  ;;  %3056 = vmatpush1.bf16.msra.mxu1 %v5356_v45  ;;  %v5448_v44 = vld [vmem:[%s7240_s1 + $0xac8] ss:$16 sps:$4 sm:$0xff]   ;;  %v5453_v45 = vld [vmem:[%s7240_s1 + $0xae4] ss:$16 sps:$4 sm:$0xff]  }
 0x12c   : > { %2811 = vmatprep.subr.bf16.mxu0 %v5361_v46  ;;  %3057 = vmatprep.subr.bf16.mxu1 %v5364_v47  ;;  %v5456_v46 = vld [vmem:[%s7240_s1 + $0xaec] ss:$16 sps:$4 sm:$0xff]   ;;  %v5451_v47 = vld [vmem:[%s7240_s1 + $0xae0] ss:$16 sps:$4 sm:$0xff]  }
 0x12f   : > { %2812 = vmatpush1.bf16.msra.mxu0 %v5359_v48  ;;  %3058 = vmatpush1.bf16.msra.mxu1 %v5362_v49  ;;  %v5454_v48 = vld [vmem:[%s7240_s1 + $0xae8] ss:$16 sps:$4 sm:$0xff]   ;;  %v5459_v49 = vld [vmem:[%s7240_s1 + $0xb04] ss:$16 sps:$4 sm:$0xff]  }
 0x130   : > { %2813 = vmatprep.subr.bf16.mxu0 %v5367_v50  ;;  %3059 = vmatprep.subr.bf16.mxu1 %v5370_v51  ;;  %v5462_v50 = vld [vmem:[%s7240_s1 + $0xb0c] ss:$16 sps:$4 sm:$0xff]   ;;  %v5457_v51 = vld [vmem:[%s7240_s1 + $0xb00] ss:$16 sps:$4 sm:$0xff]  }
 0x133   : > { %2814 = vmatpush1.bf16.msra.mxu0 %v5365_v52  ;;  %3060 = vmatpush1.bf16.msra.mxu1 %v5368_v53  ;;  %v5460_v52 = vld [vmem:[%s7240_s1 + $0xb08] ss:$16 sps:$4 sm:$0xff]   ;;  %v5465_v53 = vld [vmem:[%s7240_s1 + $0xb24] ss:$16 sps:$4 sm:$0xff]  }
 0x134   : > { %2815 = vmatprep.subr.bf16.mxu0 %v5373_v54  ;;  %3061 = vmatprep.subr.bf16.mxu1 %v5376_v55  ;;  %v5468_v54 = vld [vmem:[%s7240_s1 + $0xb2c] ss:$16 sps:$4 sm:$0xff]   ;;  %v5463_v55 = vld [vmem:[%s7240_s1 + $0xb20] ss:$16 sps:$4 sm:$0xff]  }
 0x137   : > { %2816 = vmatpush1.bf16.msra.mxu0 %v5371_v56  ;;  %3062 = vmatpush1.bf16.msra.mxu1 %v5374_v57  ;;  %v5466_v56 = vld [vmem:[%s7240_s1 + $0xb28] ss:$16 sps:$4 sm:$0xff]   ;;  %v5471_v57 = vld [vmem:[%s7240_s1 + $0xb44] ss:$16 sps:$4 sm:$0xff]  }
 0x138   : > { %2817 = vmatprep.subr.bf16.mxu0 %v5379_v58  ;;  %3063 = vmatprep.subr.bf16.mxu1 %v5382_v59  ;;  %v5474_v58 = vld [vmem:[%s7240_s1 + $0xb4c] ss:$16 sps:$4 sm:$0xff]   ;;  %v5469_v59 = vld [vmem:[%s7240_s1 + $0xb40] ss:$16 sps:$4 sm:$0xff]  }
 0x13b   : > { %2818 = vmatpush1.bf16.msra.mxu0 %v5377_v60  ;;  %3064 = vmatpush1.bf16.msra.mxu1 %v5380_v61  ;;  %v5472_v60 = vld [vmem:[%s7240_s1 + $0xb48] ss:$16 sps:$4 sm:$0xff]   ;;  %v5477_v61 = vld [vmem:[%s7240_s1 + $0xb64] ss:$16 sps:$4 sm:$0xff]  }
 0x13c   : > { %2819 = vmatprep.subr.bf16.mxu0 %v5385_v62  ;;  %3065 = vmatprep.subr.bf16.mxu1 %v5388_v63  ;;  %v5480_v62 = vld [vmem:[%s7240_s1 + $0xb6c] ss:$16 sps:$4 sm:$0xff]   ;;  %v5475_v63 = vld [vmem:[%s7240_s1 + $0xb60] ss:$16 sps:$4 sm:$0xff]  }
 0x13f   : > { %2820 = vmatpush1.bf16.msra.mxu0 %v5383_v0  ;;  %3066 = vmatpush1.bf16.msra.mxu1 %v5386_v1  ;;  %v5478_v0 = vld [vmem:[%s7240_s1 + $0xb68] ss:$16 sps:$4 sm:$0xff]   ;;  %v5483_v1 = vld [vmem:[%s7240_s1 + $0xb84] ss:$16 sps:$4 sm:$0xff]  }
 0x140   : > { %2821 = vmatprep.subr.bf16.mxu0 %v5391_v2  ;;  %3067 = vmatprep.subr.bf16.mxu1 %v5394_v3  ;;  %v5486_v2 = vld [vmem:[%s7240_s1 + $0xb8c] ss:$16 sps:$4 sm:$0xff]   ;;  %v5481_v3 = vld [vmem:[%s7240_s1 + $0xb80] ss:$16 sps:$4 sm:$0xff]  }
 0x143   : > { %2822 = vmatpush1.bf16.msra.mxu0 %v5389_v4  ;;  %3068 = vmatpush1.bf16.msra.mxu1 %v5392_v5  ;;  %v5484_v4 = vld [vmem:[%s7240_s1 + $0xb88] ss:$16 sps:$4 sm:$0xff]   ;;  %v5489_v5 = vld [vmem:[%s7240_s1 + $0xba4] ss:$16 sps:$4 sm:$0xff]  }
 0x144   : > { %2823 = vmatprep.subr.bf16.mxu0 %v5397_v6  ;;  %3069 = vmatprep.subr.bf16.mxu1 %v5400_v7  ;;  %v5492_v6 = vld [vmem:[%s7240_s1 + $0xbac] ss:$16 sps:$4 sm:$0xff]   ;;  %v5487_v7 = vld [vmem:[%s7240_s1 + $0xba0] ss:$16 sps:$4 sm:$0xff]  }
 0x147   : > { %2824 = vmatpush1.bf16.msra.mxu0 %v5395_v8  ;;  %3070 = vmatpush1.bf16.msra.mxu1 %v5398_v9  ;;  %v5490_v8 = vld [vmem:[%s7240_s1 + $0xba8] ss:$16 sps:$4 sm:$0xff]   ;;  %v5495_v9 = vld [vmem:[%s7240_s1 + $0xbc4] ss:$16 sps:$4 sm:$0xff]  }
 0x148   : > { %2825 = vmatprep.subr.bf16.mxu0 %v5403_v10  ;;  %3071 = vmatprep.subr.bf16.mxu1 %v5406_v12  ;;  %v5498_v10 = vld [vmem:[%s7240_s1 + $0xbcc] ss:$16 sps:$4 sm:$0xff]   ;;  %v5493_v12 = vld [vmem:[%s7240_s1 + $0xbc0] ss:$16 sps:$4 sm:$0xff]  }
 0x14b   : > { %2826 = vmatpush1.bf16.msra.mxu0 %v5401_v13  ;;  %3072 = vmatpush1.bf16.msra.mxu1 %v5404_v15  ;;  %v5496_v13 = vld [vmem:[%s7240_s1 + $0xbc8] ss:$16 sps:$4 sm:$0xff]   ;;  %v5501_v15 = vld [vmem:[%s7240_s1 + $0xbe4] ss:$16 sps:$4 sm:$0xff]  }
 0x14c   : > { %2836 = vmatprep.subr.bf16.mxu0 %v5411_v16  ;;  %3082 = vmatprep.subr.bf16.mxu1 %v5414_v17  ;;  %v5504_v16 = vld [vmem:[%s7240_s1 + $0xbec] ss:$16 sps:$4 sm:$0xff]   ;;  %v3300_v17 = vld [vmem:[%s7244_s5 + $0x80] sm:$0xff] }
 0x14e   : > { %2828 = vmatmul.mubr.bf16.vlgmr.msra.gmra.mrb[0].mxu0 %v4169_v18  ;;  %3074 = vmatmul.mubr.bf16.vlgmr.msra.gmra.mrb[0].mxu1 %v4169_v18  ;;  %v3301_v18 = vld [vmem:[%s7244_s5 + $0x88] sm:$0xff] }
 0x14f   : > { %2837 = vmatpush1.bf16.msra.mxu0 %v5409_v14  ;;  %3083 = vmatpush1.bf16.msra.mxu1 %v5412_v20  ;;  %v3332_v14 = vld [vmem:[%s7244_s5 + $0x180] sm:$0xff]  ;;  %v3333_v20 = vld [vmem:[%s7244_s5 + $0x188] sm:$0xff] }
 0x150   : > { %2838 = vmatprep.subr.bf16.mxu0 %v5417_v21  ;;  %3084 = vmatprep.subr.bf16.mxu1 %v5420_v11  ;;  %v5499_v21 = vld [vmem:[%s7240_s1 + $0xbe0] ss:$16 sps:$4 sm:$0xff]   ;;  %v5502_v11 = vld [vmem:[%s7240_s1 + $0xbe8] ss:$16 sps:$4 sm:$0xff]  }
 0x151   : > { %2868 = vmatprep.mubr.bf16.mxu0 %v4172_v22  ;;  %3114 = vmatprep.mubr.bf16.mxu1 %v4172_v22  ;;  %v3284_v22 = vld [vmem:[%s7244_s5] sm:$0xff] }
 0x153   : > { %2839 = vmatpush1.bf16.msra.mxu0 %v5415_v23  ;;  %3085 = vmatpush1.bf16.msra.mxu1 %v5418_v24  ;;  %v3285_v23 = vld [vmem:[%s7244_s5 + $0x8] sm:$0xff]  ;;  %v6783_v24 = vpack.c.bf16 %v3301_v18, %v3300_v17  ;;  %v3311_v17 = vld [vmem:[%s7244_s5 + $0xd8] sm:$0xff]  ;;  %v3342_v18 = vld [vmem:[%s7244_s5 + $0x1d0] sm:$0xff] }
 0x154   : > { %2840 = vmatprep.subr.bf16.mxu0 %v5423_v25  ;;  %3086 = vmatprep.subr.bf16.mxu1 %v5426_v26  ;;  %v6785_v25 = vpack.c.bf16 %v3333_v20, %v3332_v14  ;;  %v3316_v26 = vld [vmem:[%s7244_s5 + $0x100] sm:$0xff]  ;;  %v3343_v20 = vld [vmem:[%s7244_s5 + $0x1d8] sm:$0xff] }
 0x157   : > { %2841 = vmatpush1.bf16.msra.mxu0 %v5421_v27  ;;  %3087 = vmatpush1.bf16.msra.mxu1 %v5424_v28  ;;  %v3317_v27 = vld [vmem:[%s7244_s5 + $0x108] sm:$0xff]  ;;  %v3302_v28 = vld [vmem:[%s7244_s5 + $0x90] sm:$0xff] }
 0x158   : > { %2842 = vmatprep.subr.bf16.mxu0 %v5429_v29  ;;  %3088 = vmatprep.subr.bf16.mxu1 %v5432_v30  ;;  %v3303_v29 = vld [vmem:[%s7244_s5 + $0x98] sm:$0xff]  ;;  %v3334_v30 = vld [vmem:[%s7244_s5 + $0x190] sm:$0xff] }
 0x15b   : > { %2843 = vmatpush1.bf16.msra.mxu0 %v5427_v31  ;;  %3089 = vmatpush1.bf16.msra.mxu1 %v5430_v32  ;;  %v3335_v31 = vld [vmem:[%s7244_s5 + $0x198] sm:$0xff]  ;;  %v4171_v32 = vcombine.low %v6575_v19, %v6575_v19 }
 0x15c   : > { %2844 = vmatprep.subr.bf16.mxu0 %v5435_v33  ;;  %3090 = vmatprep.subr.bf16.mxu1 %v5438_v34  ;;  %v6807_v33 = vpack.c.bf16 %v3285_v23, %v3284_v22  ;;  %v6809_v34 = vpack.c.bf16 %v3317_v27, %v3316_v26  ;;  %v6821_v19 = vpack.c.bf16 %v3335_v31, %v3334_v30  ;;  %v3326_v26 = vld [vmem:[%s7244_s5 + $0x150] sm:$0xff]  ;;  %v3327_v27 = vld [vmem:[%s7244_s5 + $0x158] sm:$0xff]  ;;  %v3313_v30 = vld [vmem:[%s7244_s5 + $0xe8] sm:$0xff] }
 0x15d   : > { %v6967_v22 = vpack.c.bf16 %v3343_v20, %v3342_v18  ;;  %v3344_v31 = vld [vmem:[%s7244_s5 + $0x1e0] sm:$0xff] }
 0x15f   : > { %2845 = vmatpush1.bf16.msra.mxu0 %v5433_v35  ;;  %3091 = vmatpush1.bf16.msra.mxu1 %v5436_v36  ;;  %v3286_v35 = vld [vmem:[%s7244_s5 + $0x10] sm:$0xff]  ;;  %v3287_v36 = vld [vmem:[%s7244_s5 + $0x18] sm:$0xff] }
 0x160   : > { %2846 = vmatprep.subr.bf16.mxu0 %v5441_v37  ;;  %3092 = vmatprep.subr.bf16.mxu1 %v5444_v38  ;;  %v6819_v37 = vpack.c.bf16 %v3303_v29, %v3302_v28  ;;  %v3318_v38 = vld [vmem:[%s7244_s5 + $0x110] sm:$0xff]  ;;  %v6978_v28 = vpack.c.bf16 %v3327_v27, %v3326_v26  ;;  %v3312_v29 = vld [vmem:[%s7244_s5 + $0xe0] sm:$0xff] }
 0x162   : > { %7260 = vst [vmem:[#allocation2_spill] sm:$0xff] %v6978_v28 }
 0x163   : > { %2847 = vmatpush1.bf16.msra.mxu0 %v5439_v39  ;;  %3093 = vmatpush1.bf16.msra.mxu1 %v5442_v40  ;;  %v3319_v39 = vld [vmem:[%s7244_s5 + $0x118] sm:$0xff]  ;;  %v3304_v40 = vld [vmem:[%s7244_s5 + $0xa0] sm:$0xff] }
 0x164   : > { %2848 = vmatprep.subr.bf16.mxu0 %v5447_v41  ;;  %3094 = vmatprep.subr.bf16.mxu1 %v5450_v42  ;;  %v3305_v41 = vld [vmem:[%s7244_s5 + $0xa8] sm:$0xff]  ;;  %v3336_v42 = vld [vmem:[%s7244_s5 + $0x1a0] sm:$0xff] }
 0x167   : > { %2849 = vmatpush1.bf16.msra.mxu0 %v5445_v43  ;;  %3095 = vmatpush1.bf16.msra.mxu1 %v5448_v44  ;;  %v3337_v43 = vld [vmem:[%s7244_s5 + $0x1a8] sm:$0xff]  ;;  %v6843_v44 = vpack.c.bf16 %v3287_v36, %v3286_v35  ;;  %v3296_v36 = vld [vmem:[%s7244_s5 + $0x60] sm:$0xff] }
 0x168   : > { %2850 = vmatprep.subr.bf16.mxu0 %v5453_v45  ;;  %3096 = vmatprep.subr.bf16.mxu1 %v5456_v46  ;;  %v6845_v45 = vpack.c.bf16 %v3319_v39, %v3318_v38  ;;  %v3288_v46 = vld [vmem:[%s7244_s5 + $0x20] sm:$0xff]  ;;  %v3345_v35 = vld [vmem:[%s7244_s5 + $0x1e8] sm:$0xff] }
 0x169   : > { %v3297_v38 = vld [vmem:[%s7244_s5 + $0x68] sm:$0xff]  ;;  %v7003_v39 = vpack.c.bf16 %v3345_v35, %v3344_v31 }
 0x16b   : > { %2851 = vmatpush1.bf16.msra.mxu0 %v5451_v47  ;;  %3097 = vmatpush1.bf16.msra.mxu1 %v5454_v48  ;;  %v3289_v47 = vld [vmem:[%s7244_s5 + $0x28] sm:$0xff]  ;;  %v6855_v48 = vpack.c.bf16 %v3305_v41, %v3304_v40  ;;  %7262 = vst [vmem:[#allocation4_spill] sm:$0xff] %v7003_v39  ;;  %v7005_v40 = vpack.c.bf16 %v3297_v38, %v3296_v36  ;;  %v3328_v41 = vld [vmem:[%s7244_s5 + $0x160] sm:$0xff] }
 0x16c   : > { %2852 = vmatprep.subr.bf16.mxu0 %v5459_v49  ;;  %3098 = vmatprep.subr.bf16.mxu1 %v5462_v50  ;;  %v6857_v49 = vpack.c.bf16 %v3337_v43, %v3336_v42  ;;  %v3320_v50 = vld [vmem:[%s7244_s5 + $0x120] sm:$0xff]  ;;  %v3329_v42 = vld [vmem:[%s7244_s5 + $0x168] sm:$0xff] }
 0x16d   : > { %7263 = vst [vmem:[#allocation5_spill] sm:$0xff] %v7005_v40  ;;  %v7014_v43 = vpack.c.bf16 %v3329_v42, %v3328_v41 }
 0x16f   : > { %2853 = vmatpush1.bf16.msra.mxu0 %v5457_v51  ;;  %3099 = vmatpush1.bf16.msra.mxu1 %v5460_v52  ;;  %v3321_v51 = vld [vmem:[%s7244_s5 + $0x128] sm:$0xff]  ;;  %v3306_v52 = vld [vmem:[%s7244_s5 + $0xb0] sm:$0xff]  ;;  %7264 = vst [vmem:[#allocation6_spill] sm:$0xff] %v7014_v43 }
 0x170   : > { %2854 = vmatprep.subr.bf16.mxu0 %v5465_v53  ;;  %3100 = vmatprep.subr.bf16.mxu1 %v5468_v54  ;;  %v3307_v53 = vld [vmem:[%s7244_s5 + $0xb8] sm:$0xff]  ;;  %v3338_v54 = vld [vmem:[%s7244_s5 + $0x1b0] sm:$0xff] }
 0x173   : > { %2855 = vmatpush1.bf16.msra.mxu0 %v5463_v55  ;;  %3101 = vmatpush1.bf16.msra.mxu1 %v5466_v56  ;;  %v3339_v55 = vld [vmem:[%s7244_s5 + $0x1b8] sm:$0xff]  ;;  %v6879_v56 = vpack.c.bf16 %v3289_v47, %v3288_v46  ;;  %v3314_v46 = vld [vmem:[%s7244_s5 + $0xf0] sm:$0xff] }
 0x174   : > { %2856 = vmatprep.subr.bf16.mxu0 %v5471_v57  ;;  %3102 = vmatprep.subr.bf16.mxu1 %v5474_v58  ;;  %v6881_v57 = vpack.c.bf16 %v3321_v51, %v3320_v50  ;;  %v3290_v58 = vld [vmem:[%s7244_s5 + $0x30] sm:$0xff]  ;;  %v3315_v47 = vld [vmem:[%s7244_s5 + $0xf8] sm:$0xff] }
 0x175   : > { %v3346_v50 = vld [vmem:[%s7244_s5 + $0x1f0] sm:$0xff]  ;;  %v7028_v51 = vpack.c.bf16 %v3315_v47, %v3314_v46  ;;  %v5517_v46 = vmov 1966171168  }
 0x176   : > { %v3210_v47 = vunpack.c.l.s4 %v5517_v46 }
 0x177   : > { %2857 = vmatpush1.bf16.msra.mxu0 %v5469_v59  ;;  %3103 = vmatpush1.bf16.msra.mxu1 %v5472_v60  ;;  %v6888_v59 = vpack.c.bf16 %v3307_v53, %v3306_v52  ;;  %v6890_v60 = vpack.c.bf16 %v3339_v55, %v3338_v54  ;;  %7265 = vst [vmem:[#allocation7_spill] sm:$0xff] %v7028_v51  ;;  %v3347_v52 = vld [vmem:[%s7244_s5 + $0x1f8] sm:$0xff]  ;;  %v3298_v53 = vld [vmem:[%s7244_s5 + $0x70] sm:$0xff] }
 0x178   : > { %2858 = vmatprep.subr.bf16.mxu0 %v5477_v61  ;;  %3104 = vmatprep.subr.bf16.mxu1 %v5480_v62  ;;  %v3291_v61 = vld [vmem:[%s7244_s5 + $0x38] sm:$0xff]  ;;  %v3322_v62 = vld [vmem:[%s7244_s5 + $0x130] sm:$0xff]  ;;  %v7039_v55 = vpack.c.bf16 %v3347_v52, %v3346_v50 }
 0x179   : > { %v3299_v54 = vld [vmem:[%s7244_s5 + $0x78] sm:$0xff] }
 0x17a   : > { %7266 = vst [vmem:[#allocation8_spill] sm:$0xff] %v7039_v55 }
 0x17b   : > { %2859 = vmatpush1.bf16.msra.mxu0 %v5475_v63  ;;  %3105 = vmatpush1.bf16.msra.mxu1 %v5478_v0  ;;  %v3323_v63 = vld [vmem:[%s7244_s5 + $0x138] sm:$0xff]  ;;  %v6903_v0 = vpack.c.bf16 %v3291_v61, %v3290_v58  ;;  %v7041_v58 = vpack.c.bf16 %v3299_v54, %v3298_v53  ;;  %v3330_v61 = vld [vmem:[%s7244_s5 + $0x170] sm:$0xff] }
 0x17c   : > { %2860 = vmatprep.subr.bf16.mxu0 %v5483_v1  ;;  %3106 = vmatprep.subr.bf16.mxu1 %v5486_v2  ;;  %v6905_v1 = vpack.c.bf16 %v3323_v63, %v3322_v62  ;;  %v3308_v2 = vld [vmem:[%s7244_s5 + $0xc0] sm:$0xff]  ;;  %v3331_v62 = vld [vmem:[%s7244_s5 + $0x178] sm:$0xff] }
 0x17d   : > { %7267 = vst [vmem:[#allocation9_spill] sm:$0xff] %v7041_v58  ;;  %v7050_v63 = vpack.c.bf16 %v3331_v62, %v3330_v61 }
 0x17f   : > { %2861 = vmatpush1.bf16.msra.mxu0 %v5481_v3  ;;  %3107 = vmatpush1.bf16.msra.mxu1 %v5484_v4  ;;  %v3309_v3 = vld [vmem:[%s7244_s5 + $0xc8] sm:$0xff]  ;;  %v3340_v4 = vld [vmem:[%s7244_s5 + $0x1c0] sm:$0xff]  ;;  %7268 = vst [vmem:[#allocation10_spill] sm:$0xff] %v7050_v63 }
 0x180   : > { %2862 = vmatprep.subr.bf16.mxu0 %v5489_v5  ;;  %3108 = vmatprep.subr.bf16.mxu1 %v5492_v6  ;;  %v6920_v5 = vpack.c.bf16 %v3309_v3, %v3308_v2  ;;  %v3341_v6 = vld [vmem:[%s7244_s5 + $0x1c8] sm:$0xff]  ;;  %v3178_v2 = vlaneseq }
 0x182   : > { %v3179_v3 = vshrl.u32 %v3178_v2, 7 }
 0x183   : > { %2863 = vmatpush1.bf16.msra.mxu0 %v5487_v7  ;;  %3109 = vmatpush1.bf16.msra.mxu1 %v5490_v8  ;;  %v3292_v7 = vld [vmem:[%s7244_s5 + $0x40] sm:$0xff]  ;;  %v3293_v8 = vld [vmem:[%s7244_s5 + $0x48] sm:$0xff] }
 0x184   : > { %2864 = vmatprep.subr.bf16.mxu0 %v5495_v9  ;;  %3110 = vmatprep.subr.bf16.mxu1 %v5498_v10  ;;  %v6931_v9 = vpack.c.bf16 %v3341_v6, %v3340_v4  ;;  %v6933_v10 = vpack.c.bf16 %v3293_v8, %v3292_v7  ;;  %v7060_v4 = vld [vmem:[%s7241_s2] sm:$0xf]  ;;  %v7065_v7 = vsub.s32 0, %v3179_v3 }
 0x185   : > { %v7063_v6 = vmul.f32 8.0, %v7060_v4 }
 0x187   : > { %2865 = vmatpush1.bf16.msra.mxu0 %v5493_v12  ;;  %3111 = vmatpush1.bf16.msra.mxu1 %v5496_v13  ;;  %v3324_v12 = vld [vmem:[%s7244_s5 + $0x140] sm:$0xff]  ;;  %v3325_v13 = vld [vmem:[%s7244_s5 + $0x148] sm:$0xff] }
 0x188   : > { %2866 = vmatprep.subr.bf16.mxu0 %v5501_v15  ;;  %3112 = vmatprep.subr.bf16.mxu1 %v5504_v16  ;;  %v6942_v15 = vpack.c.bf16 %v3325_v13, %v3324_v12  ;;  %v3310_v16 = vld [vmem:[%s7244_s5 + $0xd0] sm:$0xff]  ;;  %v7071_v13 = vsub.s32 1, %v3179_v3 }
 0x189   : > { %v6956_v14 = vpack.c.bf16 %v3311_v17, %v3310_v16 }
 0x18b   : > { %2867 = vmatpush1.bf16.msra.mxu0 %v5499_v21  ;;  %3113 = vmatpush1.bf16.msra.mxu1 %v5502_v11  ;;  %v3294_v21 = vld [vmem:[%s7244_s5 + $0x50] sm:$0xff]  ;;  %v3295_v11 = vld [vmem:[%s7244_s5 + $0x58] sm:$0xff] }
 0x18c   : > { %4709 = vmatprep.subr.bf16.mxu0 %v6783_v24  ;;  %4741 = vmatprep.subr.bf16.mxu1 %v6785_v25  ;;  %v6969_v23 = vpack.c.bf16 %v3295_v11, %v3294_v21 }
 0x18e   : > { %2869 = vmatmul.mubr.bf16.vlgmr.msra.gmra.mrb[0].mxu0 %v4171_v32  ;;  %3115 = vmatmul.mubr.bf16.vlgmr.msra.gmra.mrb[0].mxu1 %v4171_v32  ;;  %v6992_v32 = vpack.c.bf16 %v3313_v30, %v3312_v29 }
 0x18f   : > { %4711 = vmatpush3.bf16.msra.mxu0 %v6807_v33  ;;  %4743 = vmatpush3.bf16.msra.mxu1 %v6809_v34 }
 0x190   : > { %4713 = vmatprep.subr.bf16.mxu0 %v6819_v37  ;;  %4745 = vmatprep.subr.bf16.mxu1 %v6821_v19  ;;  %7261 = vst [vmem:[#allocation3_spill] sm:$0xff] %v6992_v32 }
 0x193   : > { %4715 = vmatpush3.bf16.msra.mxu0 %v6843_v44  ;;  %4747 = vmatpush3.bf16.msra.mxu1 %v6845_v45 }
 0x194   : > { %4717 = vmatprep.subr.bf16.mxu0 %v6855_v48  ;;  %4749 = vmatprep.subr.bf16.mxu1 %v6857_v49 }
 0x197   : > { %4719 = vmatpush3.bf16.msra.mxu0 %v6879_v56  ;;  %4751 = vmatpush3.bf16.msra.mxu1 %v6881_v57 }
 0x198   : > { %4721 = vmatprep.subr.bf16.mxu0 %v6888_v59  ;;  %4753 = vmatprep.subr.bf16.mxu1 %v6890_v60 }
 0x19b   : > { %4723 = vmatpush3.bf16.msra.mxu0 %v6903_v0  ;;  %4755 = vmatpush3.bf16.msra.mxu1 %v6905_v1 }
 0x19c   : > { %4725 = vmatprep.subr.bf16.mxu0 %v6920_v5  ;;  %4757 = vmatprep.subr.bf16.mxu1 %v6931_v9 }
 0x19f   : > { %4727 = vmatpush3.bf16.msra.mxu0 %v6933_v10  ;;  %4759 = vmatpush3.bf16.msra.mxu1 %v6942_v15 }
 0x1a0   : > { %4729 = vmatprep.subr.bf16.mxu0 %v6956_v14  ;;  %4761 = vmatprep.subr.bf16.mxu1 %v6967_v22 }
 0x1a3   : > { %4731 = vmatpush3.bf16.msra.mxu0 %v6969_v23  ;;  %4763 = vmatpush3.bf16.msra.mxu1 %v6978_v28 }
 0x1a4   : > { %4733 = vmatprep.subr.bf16.mxu0 %v6992_v32  ;;  %4765 = vmatprep.subr.bf16.mxu1 %v7003_v39 }
 0x1a7   : > { %4735 = vmatpush3.bf16.msra.mxu0 %v7005_v40  ;;  %4767 = vmatpush3.bf16.msra.mxu1 %v7014_v43 }
 0x1a8   : > { %4737 = vmatprep.subr.bf16.mxu0 %v7028_v51  ;;  %4769 = vmatprep.subr.bf16.mxu1 %v7039_v55 }
 0x1ab   : > { %4739 = vmatpush3.bf16.msra.mxu0 %v7041_v58  ;;  %4771 = vmatpush3.bf16.msra.mxu1 %v7050_v63 }
 0x1ac   : > { %4773 = vmatprep.subr.bf16.mxu0 %v6783_v24  ;;  %4805 = vmatprep.subr.bf16.mxu1 %v6785_v25  ;;  %v7073_v24 = vsub.s32 2, %v3179_v3 }
 0x261   : > { %v7067_v8 = vpop.f32.mrb[0].mxu0  ;;  %v7069_v12 = vpop.f32.mrb[0].mxu1 }
 0x262   : > { %7269 = vst [vmem:[#allocation11_spill] sm:$0xff] %v7067_v8  ;;  %7270 = vst [vmem:[#allocation12_spill] sm:$0xff] %v7069_v12  ;;  %v3124_v25 = vrot.slane %v7067_v8, 4  ;;  %v3148_v16 = vmul.f32 %v7067_v8, %v7067_v8  ;;  %v3136_v17 = vrot.slane %v7069_v12, 4  ;;  %v3150_v18 = vmul.f32 %v7069_v12, %v7069_v12  ;;  %v7081_v20 = vpop.f32.mrb[1].mxu0  ;;  %v7083_v21 = vpop.f32.mrb[1].mxu1 }
 0x263   : > { %7271 = vst [vmem:[#allocation13_spill] sm:$0xff] %v7081_v20  ;;  %7272 = vst [vmem:[#allocation14_spill] sm:$0xff] %v7083_v21  ;;  %v3130_v11 = vrot.slane %v7081_v20, 4  ;;  %v3149_v26 = vmul.f32 %v7081_v20, %v7081_v20  ;;  %v3142_v27 = vrot.slane %v7083_v21, 4  ;;  %v3151_v29 = vmul.f32 %v7083_v21, %v7083_v21  ;;  %v2874_v30 = vpop.f32.mrb[2].mxu0  ;;  %v3120_v31 = vpop.f32.mrb[2].mxu1 }
 0x264   : > { %v3125_v35 = vadd.f32 %v3124_v25, %v7067_v8  ;;  %v3152_v36 = vrot.slane %v3148_v16, 4  ;;  %v3137_v38 = vadd.f32 %v3136_v17, %v7069_v12  ;;  %v2875_v41 = vpop.f32.mrb[3].mxu0  ;;  %v3121_v42 = vpop.f32.mrb[3].mxu1  ;;  %v3164_v30 = vrot.slane %v3150_v18, 4 }
 0x265   : > { %v3131_v50 = vadd.f32 %v3130_v11, %v7081_v20  ;;  %v3158_v52 = vrot.slane %v3149_v26, 4  ;;  %v3143_v53 = vadd.f32 %v3142_v27, %v7083_v21  ;;  %v3170_v54 = vrot.slane %v3151_v29, 4 }
 0x266   : > { %v3126_v61 = vrot.slane %v3125_v35, 2  ;;  %v3153_v62 = vadd.f32 %v3152_v36, %v3148_v16  ;;  %v3138_v2 = vrot.slane %v3137_v38, 2  ;;  %v3185_v25 = vrot.slane %v7063_v6, %v7071_v13 }
 0x267   : > { %v3132_v31 = vrot.slane %v3131_v50, 2  ;;  %v3144_v63 = vrot.slane %v3143_v53, 2  ;;  %v7097_v17 = vsub.s32 3, %v3179_v3  ;;  %v3159_v46 = vadd.f32 %v3158_v52, %v3149_v26 }
 0x268   : > { %v3127_v41 = vadd.f32 %v3126_v61, %v3125_v35  ;;  %v3139_v42 = vadd.f32 %v3138_v2, %v3137_v38  ;;  %v3171_v12 = vadd.f32 %v3170_v54, %v3151_v29  ;;  %v3211_v8 = vunpack.c.0.s8 %v3210_v47 }
 0x269   : > { %v3133_v11 = vadd.f32 %v3132_v31, %v3131_v50  ;;  %v3145_v20 = vadd.f32 %v3144_v63, %v3143_v53  ;;  %v3181_v27 = vrot.slane %v7063_v6, %v7065_v7  ;;  %v3154_v36 = vrot.slane %v3153_v62, 2 }
 0x26a   : > { %v3128_v16 = vrot.slane %v3127_v41, 1  ;;  %v3140_v21 = vrot.slane %v3139_v42, 1  ;;  %v3165_v58 = vadd.f32 %v3164_v30, %v3150_v18  ;;  %v3193_v43 = vrot.slane %v7063_v6, %v7097_v17 }
 0x26b   : > { %v3134_v55 = vrot.slane %v3133_v11, 1  ;;  %v3146_v51 = vrot.slane %v3145_v20, 1  ;;  %v3189_v35 = vrot.slane %v7063_v6, %v7073_v24  ;;  %v3160_v38 = vrot.slane %v3159_v46, 2 }
 0x26c   : > { %v3129_v26 = vadd.f32 %v3128_v16, %v3127_v41  ;;  %v3141_v29 = vadd.f32 %v3140_v21, %v3139_v42  ;;  %v3172_v63 = vrot.slane %v3171_v12, 2  ;;  %v7105_v50 = vsub.s32 %v3211_v8, %v3179_v3  ;;  %v3639_v16 = vld [vmem:[%s7245_s6 + $0x18] sm:$0xff] }
 0x26d   : > { %v3135_v47 = vadd.f32 %v3134_v55, %v3133_v11  ;;  %v3147_v52 = vadd.f32 %v3146_v51, %v3145_v20  ;;  %v3155_v53 = vadd.f32 %v3154_v36, %v3153_v62  ;;  %v3166_v54 = vrot.slane %v3165_v58, 2  ;;  %v3637_v11 = vld [vmem:[%s7245_s6 + $0x8] sm:$0xff] }
 0x26e   : > { %v3161_v31 = vadd.f32 %v3160_v38, %v3159_v46  ;;  %v3173_v40 = vadd.f32 %v3172_v63, %v3171_v12  ;;  %v3198_v39 = vadd.f32 %v3181_v27, %v3129_v26  ;;  %v3200_v32 = vadd.f32 %v3189_v35, %v3141_v29  ;;  %v3641_v27 = vld [vmem:[%s7245_s6 + $0x28] sm:$0xff]  ;;  %v3643_v35 = vld [vmem:[%s7245_s6 + $0x38] sm:$0xff] }
 0x26f   : > { %v3199_v61 = vadd.f32 %v3185_v25, %v3135_v47  ;;  %v3207_v18 = vcombine.low %v3129_v26, %v3135_v47  ;;  %v3201_v2 = vadd.f32 %v3193_v43, %v3147_v52  ;;  %v3208_v30 = vcombine.low %v3141_v29, %v3147_v52  ;;  %v3636_v26 = vld [vmem:[%s7245_s6] sm:$0xff]  ;;  %v3638_v47 = vld [vmem:[%s7245_s6 + $0x10] sm:$0xff] }
 0x270   : > { %v3167_v55 = vadd.f32 %v3166_v54, %v3165_v58  ;;  %v3202_v43 = vmul.f32 2.0, %v7060_v4  ;;  %v3258_v3 = vmul.f32 %v7063_v6, %v7060_v4  ;;  %v3156_v8 = vrot.slane %v3155_v53, 1  ;;  %v3640_v29 = vld [vmem:[%s7245_s6 + $0x20] sm:$0xff]  ;;  %v3642_v52 = vld [vmem:[%s7245_s6 + $0x30] sm:$0xff]  ;;  %v3645_v54 = vld [vmem:[%s7245_s6 + $0x48] sm:$0xff] }
 0x271   : > { %v3215_v28 = vrot.slane %v3207_v18, %v7105_v50  ;;  %3412 = vmatprep.mubr.f32.mxu0 %v3199_v61  ;;  %v3222_v21 = vrot.slane %v3208_v30, %v7105_v50  ;;  %3482 = vmatprep.mubr.f32.mxu1 %v3201_v2  ;;  %v3162_v12 = vrot.slane %v3161_v31, 1  ;;  %v3174_v20 = vrot.slane %v3173_v40, 1  ;;  %v3649_v61 = vld [vmem:[%s7245_s6 + $0x68] sm:$0xff]  ;;  %v3647_v18 = vld [vmem:[%s7245_s6 + $0x58] sm:$0xff] }
 0x272   : > { %3413 = vmatmul.mubr.f32.vlgmr.msra.gmra.mrb[4].mxu0 %v3198_v39  ;;  %3483 = vmatmul.mubr.f32.vlgmr.msra.gmra.mrb[4].mxu1 %v3200_v32  ;;  %v3168_v32 = vrot.slane %v3167_v55, 1  ;;  %v3157_v58 = vadd.f32 %v3156_v8, %v3155_v53  ;;  %v4836_v36 = vpack.c.bf16 %v3641_v27, %v3637_v11  ;;  %v4844_v38 = vpack.c.bf16 %v3643_v35, %v3639_v16  ;;  %v3651_v30 = vld [vmem:[%s7245_s6 + $0x78] sm:$0xff] }
 0x273   : > { %v3223_v51 = vcombine.low %v3215_v28, %v3222_v21  ;;  %4775 = vmatpush3.bf16.msra.mxu0 %v6807_v33  ;;  %4807 = vmatpush3.bf16.msra.mxu1 %v6809_v34  ;;  %v3267_v34 = vrot.slane %v3258_v3, %v7071_v13  ;;  %v3275_v28 = vrot.slane %v3258_v3, %v7097_v17  ;;  %v3648_v21 = vld [vmem:[%s7245_s6 + $0x60] sm:$0xff] }
 0x274   : > { %4777 = vmatprep.subr.bf16.mxu0 %v6819_v37  ;;  %4809 = vmatprep.subr.bf16.mxu1 %v6821_v19  ;;  %v3163_v37 = vadd.f32 %v3162_v12, %v3161_v31  ;;  %v3175_v19 = vadd.f32 %v3174_v20, %v3173_v40  ;;  %v3169_v25 = vadd.f32 %v3168_v32, %v3167_v55  ;;  %v3644_v31 = vld [vmem:[%s7245_s6 + $0x40] sm:$0xff]  ;;  %v5518_v12 = vmov 0.0  }
 0x275   : > { %v3230_v39 = vrot.slane %v3223_v51, %v7105_v50  ;;  %v4838_v63 = vpack.c.bf16 %v3640_v29, %v3636_v26  ;;  %v4846_v53 = vpack.c.bf16 %v3642_v52, %v3638_v47  ;;  %v4840_v2 = vpack.c.bf16 %v3649_v61, %v3645_v54 }
 0x276   : > { %v4848_v55 = vpack.c.bf16 %v3651_v30, %v3647_v18  ;;  %v4842_v51 = vpack.c.bf16 %v3648_v21, %v3644_v31  ;;  %v7282_v31 = vld [vmem:[#allocation11_spill] sm:$0xff] }
 0x277   : > { %4779 = vmatpush3.bf16.msra.mxu0 %v6843_v44  ;;  %4811 = vmatpush3.bf16.msra.mxu1 %v6845_v45  ;;  %v3232_v33 = vmul.f32 %v3230_v39, %v3202_v43  ;;  %v3646_v43 = vld [vmem:[%s7245_s6 + $0x50] sm:$0xff] }
 0x278   : > { %4781 = vmatprep.subr.bf16.mxu0 %v6855_v48  ;;  %4813 = vmatprep.subr.bf16.mxu1 %v6857_v49 }
 0x279   : > { %v3241_v6 = vrot.slane %v3232_v33, %v7071_v13  ;;  %v3249_v62 = vrot.slane %v3232_v33, %v7097_v17  ;;  %v3237_v44 = vrot.slane %v3232_v33, %v7065_v7  ;;  %v3245_v45 = vrot.slane %v3232_v33, %v7073_v24 }
 0x27b   : > { %4783 = vmatpush3.bf16.msra.mxu0 %v6879_v56  ;;  %4815 = vmatpush3.bf16.msra.mxu1 %v6881_v57  ;;  %v3255_v41 = vadd.f32 %v3241_v6, %v3163_v37  ;;  %v3257_v48 = vadd.f32 %v3249_v62, %v3175_v19  ;;  %v3254_v42 = vadd.f32 %v3237_v44, %v3157_v58  ;;  %v7273_v56 = vld [vmem:[#allocation2_spill] sm:$0xff]  ;;  %v7274_v57 = vld [vmem:[#allocation3_spill] sm:$0xff] }
 0x27c   : > { %4785 = vmatprep.subr.bf16.mxu0 %v6888_v59  ;;  %4817 = vmatprep.subr.bf16.mxu1 %v6890_v60  ;;  %v3256_v49 = vadd.f32 %v3245_v45, %v3169_v25  ;;  %v7275_v59 = vld [vmem:[#allocation4_spill] sm:$0xff]  ;;  %v7276_v60 = vld [vmem:[#allocation5_spill] sm:$0xff] }
 0x27d   : > { %v3281_v40 = vadd.f32 %v3267_v34, %v3255_v41  ;;  %v3283_v46 = vadd.f32 %v3275_v28, %v3257_v48 }
 0x27f   : > { %4787 = vmatpush3.bf16.msra.mxu0 %v6903_v0  ;;  %4819 = vmatpush3.bf16.msra.mxu1 %v6905_v1  ;;  %v7277_v0 = vld [vmem:[#allocation6_spill] sm:$0xff]  ;;  %v7278_v1 = vld [vmem:[#allocation7_spill] sm:$0xff] }
 0x280   : > { %3552 = vmatprep.mubr.f32.mxu0 %v3281_v40  ;;  %3622 = vmatprep.mubr.f32.mxu1 %v3283_v46 }
 0x281   : > { %4789 = vmatprep.subr.bf16.mxu0 %v6920_v5  ;;  %4821 = vmatprep.subr.bf16.mxu1 %v6931_v9  ;;  %v7279_v5 = vld [vmem:[#allocation8_spill] sm:$0xff]  ;;  %v3263_v9 = vrot.slane %v3258_v3, %v7065_v7 }
 0x283   : > { %4791 = vmatpush3.bf16.msra.mxu0 %v6933_v10  ;;  %4823 = vmatpush3.bf16.msra.mxu1 %v6942_v15  ;;  %v3271_v10 = vrot.slane %v3258_v3, %v7073_v24  ;;  %v7280_v15 = vld [vmem:[#allocation9_spill] sm:$0xff]  ;;  %v3650_v3 = vld [vmem:[%s7245_s6 + $0x70] sm:$0xff] }
 0x284   : > { %4793 = vmatprep.subr.bf16.mxu0 %v6956_v14  ;;  %4825 = vmatprep.subr.bf16.mxu1 %v6967_v22  ;;  %v7281_v14 = vld [vmem:[#allocation10_spill] sm:$0xff]  ;;  %v3280_v22 = vadd.f32 %v3263_v9, %v3254_v42  ;;  %v4850_v8 = vpack.c.bf16 %v3650_v3, %v3646_v43  ;;  %v7284_v3 = vld [vmem:[#allocation13_spill] sm:$0xff] }
 0x287   : > { %4795 = vmatpush3.bf16.msra.mxu0 %v6969_v23  ;;  %4827 = vmatpush3.bf16.msra.mxu1 %v7273_v56  ;;  %v3282_v23 = vadd.f32 %v3271_v10, %v3256_v49 }
 0x288   : > { %4797 = vmatprep.subr.bf16.mxu0 %v7274_v57  ;;  %4829 = vmatprep.subr.bf16.mxu1 %v7275_v59 }
 0x28b   : > { %4799 = vmatpush3.bf16.msra.mxu0 %v7276_v60  ;;  %4831 = vmatpush3.bf16.msra.mxu1 %v7277_v0 }
 0x28c   : > { %4801 = vmatprep.subr.bf16.mxu0 %v7278_v1  ;;  %4833 = vmatprep.subr.bf16.mxu1 %v7279_v5 }
 0x28f   : > { %4803 = vmatpush3.bf16.msra.mxu0 %v7280_v15  ;;  %4835 = vmatpush3.bf16.msra.mxu1 %v7281_v14  ;;  %v3943_v14 = vld [vmem:[%s7242_s3] sm:$0xf] }
 0x290   : > { %4837 = vmatprep.subr.bf16.mxu0 %v4836_v36  ;;  %4845 = vmatprep.subr.bf16.mxu1 %v4844_v38  ;;  %v3952_v11 = vrot.slane %v3943_v14, %v7071_v13  ;;  %v3960_v27 = vrot.slane %v3943_v14, %v7097_v17 }
 0x292   : > { %3553 = vmatmul.mubr.f32.vlgmr.msra.gmra.mrb[6].mxu0 %v3280_v22  ;;  %3623 = vmatmul.mubr.f32.vlgmr.msra.gmra.mrb[6].mxu1 %v3282_v23  ;;  %v3948_v22 = vrot.slane %v3943_v14, %v7065_v7  ;;  %v3956_v23 = vrot.slane %v3943_v14, %v7073_v24 }
 0x293   : > { %4839 = vmatpush1.bf16.msra.mxu0 %v4838_v63  ;;  %4847 = vmatpush1.bf16.msra.mxu1 %v4846_v53 }
 0x294   : > { %4841 = vmatprep.subr.bf16.mxu0 %v4840_v2  ;;  %4849 = vmatprep.subr.bf16.mxu1 %v4848_v55 }
 0x295   : > { %3720 = vmatprep.mubr.f32.mxu0 %v5518_v12  ;;  %3791 = vmatprep.mubr.f32.mxu1 %v5518_v12 }
 0x297   : > { %4843 = vmatpush1.bf16.msra.mxu0 %v4842_v51  ;;  %4851 = vmatpush1.bf16.msra.mxu1 %v4850_v8 }
 0x298   : > { %4853 = vmatprep.subr.bf16.mxu0 %v4836_v36  ;;  %4861 = vmatprep.subr.bf16.mxu1 %v4844_v38 }
 0x345   : > { %v4600_v20 = vpop.f32.mrb[4].mxu0  ;;  %v4635_v39 = vpop.f32.mrb[4].mxu1 }
 0x346   : > { %v4601_v32 = vpop.f32.mrb[5].mxu0  ;;  %v4636_v33 = vpop.f32.mrb[5].mxu1 }
 0x347   : > { %v4602_v34 = vadd.f32 %v4601_v32, %v4600_v20  ;;  %v4637_v28 = vadd.f32 %v4636_v33, %v4635_v39  ;;  %v7285_v20 = vld [vmem:[#allocation14_spill] sm:$0xff] }
 0x349   : > { %v3485_v37 = vadd.f32 %v4637_v28, %v4602_v34  ;;  %v3969_v28 = vld [vmem:[%s7243_s4] sm:$0xf] }
 0x34b   : > { %v3629_v19 = vmul.f32 0.0078125, %v3485_v37 }
 0x34d   : > { %4557 = vmatmul.mubr.msk.f32.vlgmr.msra.gmra.mrb[8].mxu0 %vm3652_vm0, %v3629_v19  ;;  %4558 = vmatmul.mubr.msk.f32.vlgmr.msra.gmra.mrb[8].mxu1 %vm3652_vm0, %v3629_v19  ;;  %v3631_v42 = vmul.f32 %v3629_v19, %v3629_v19 }
 0x34e   : > { %4855 = vmatpush1.bf16.msra.mxu0 %v4838_v63  ;;  %4863 = vmatpush1.bf16.msra.mxu1 %v4846_v53 }
 0x34f   : > { %4857 = vmatprep.subr.bf16.mxu0 %v4840_v2  ;;  %4865 = vmatprep.subr.bf16.mxu1 %v4848_v55  ;;  %v7283_v55 = vld [vmem:[#allocation12_spill] sm:$0xff] }
 0x350   : > { %3865 = vmatprep.mubr.f32.mxu0 %v5518_v12  ;;  %3936 = vmatprep.mubr.f32.mxu1 %v5518_v12 }
 0x352   : > { %4859 = vmatpush1.bf16.msra.mxu0 %v4842_v51  ;;  %4867 = vmatpush1.bf16.msra.mxu1 %v4850_v8 }
 0x365   : > { %v4670_v58 = vpop.f32.mrb[6].mxu0  ;;  %v4705_v6 = vpop.f32.mrb[6].mxu1 }
 0x366   : > { %v4671_v62 = vpop.f32.mrb[7].mxu0  ;;  %v4706_v44 = vpop.f32.mrb[7].mxu1 }
 0x367   : > { %v4672_v45 = vadd.f32 %v4671_v62, %v4670_v58  ;;  %v4707_v25 = vadd.f32 %v4706_v44, %v4705_v6 }
 0x369   : > { %v3625_v41 = vadd.f32 %v4707_v25, %v4672_v45 }
 0x36b   : > { %v3630_v48 = vmul.f32 0.0078125, %v3625_v41 }
 0x36d   : > { %v3632_v49 = vsub.f32 %v3630_v48, %v3631_v42 }
 0x36f   : > { %v3633_v40 = vmax.f32 %v3632_v49, 0.0 }
 0x371   : > { %v3634_v46 = vadd.f32 1e-05, %v3633_v40 }
 0x373   : > { %5507 = vrsqrt.f32 %v3634_v46 }
 0x37d   : > { %v5508_v56 = vpop.eup %5507 }
 0x37e   : > { %4559 = vmatmul.mubr.msk.f32.vlgmr.msra.gmra.mrb[10].mxu0 %vm3652_vm0, %v5508_v56  ;;  %4560 = vmatmul.mubr.msk.f32.vlgmr.msra.gmra.mrb[10].mxu1 %vm3652_vm0, %v5508_v56 }
 0x420   : > { %v3722_v57 = vpop.f32.mrb[8].mxu0  ;;  %v3793_v59 = vpop.f32.mrb[8].mxu1 }
 0x421   : > { %v3724_v60 = vpop.f32.mrb[9].mxu0  ;;  %v3795_v0 = vpop.f32.mrb[9].mxu1 }
 0x422   : > { %v3974_v1 = vcombine.low %v3722_v57, %v3724_v60  ;;  %v3975_v5 = vcombine.low %v3793_v59, %v3795_v0 }
 0x424   : > { %v3982_v9 = vrot.slane %v3974_v1, %v7105_v50  ;;  %v3989_v10 = vrot.slane %v3975_v5, %v7105_v50 }
 0x426   : > { %v3990_v15 = vcombine.low %v3982_v9, %v3989_v10 }
 0x428   : > { %v3997_v30 = vrot.slane %v3990_v15, %v7105_v50 }
 0x42a   : > { %v3999_v33 = vsub.f32 %v7060_v4, %v3997_v30 }
 0x451   : > { %v3867_v16 = vpop.f32.mrb[10].mxu0  ;;  %v3938_v36 = vpop.f32.mrb[10].mxu1 }
 0x452   : > { %v3965_v35 = vmul.f32 %v3948_v22, %v3867_v16  ;;  %v3967_v26 = vmul.f32 %v3956_v23, %v3938_v36  ;;  %v3869_v29 = vpop.f32.mrb[11].mxu0  ;;  %v3940_v38 = vpop.f32.mrb[11].mxu1 }
 0x453   : > { %v3966_v63 = vmul.f32 %v3952_v11, %v3869_v29  ;;  %v3968_v47 = vmul.f32 %v3960_v27, %v3940_v38 }
 0x454   : > { %v4034_v52 = vrot.slane %v3965_v35, %v7065_v7  ;;  %v4042_v53 = vrot.slane %v3967_v26, %v7065_v7 }
 0x455   : > { %v4004_v54 = vcombine.low %v3965_v35, %v3966_v63  ;;  %v4038_v61 = vrot.slane %v3966_v63, %v7065_v7  ;;  %v4005_v18 = vcombine.low %v3967_v26, %v3968_v47  ;;  %v4046_v2 = vrot.slane %v3968_v47, %v7065_v7 }
 0x456   : > { %v4047_v21 = vmul.f32 %v4034_v52, %v7282_v31  ;;  %v4049_v51 = vmul.f32 %v4042_v53, %v7283_v55 }
 0x457   : > { %v4012_v43 = vrot.slane %v4004_v54, %v7105_v50  ;;  %v4048_v8 = vmul.f32 %v4038_v61, %v7284_v3  ;;  %v4019_v12 = vrot.slane %v4005_v18, %v7105_v50  ;;  %v4050_v39 = vmul.f32 %v4046_v2, %v7285_v20 }
 0x459   : > { %v4020_v32 = vcombine.low %v4012_v43, %v4019_v12 }
 0x45b   : > { %v4027_v34 = vrot.slane %v4020_v32, %v7105_v50 }
 0x45d   : > { %v4029_v37 = vmul.f32 %v4027_v34, %v3999_v33 }
 0x45f   : > { %v4030_v19 = vadd.f32 %v4029_v37, %v3969_v28 }
 0x461   : > { %v4055_v58 = vrot.slane %v4030_v19, %v7065_v7  ;;  %v4059_v6 = vrot.slane %v4030_v19, %v7071_v13  ;;  %v4063_v62 = vrot.slane %v4030_v19, %v7073_v24  ;;  %v4067_v44 = vrot.slane %v4030_v19, %v7097_v17 }
 0x463   : > { %v4072_v45 = vadd.f32 %v4055_v58, %v4047_v21  ;;  %v4073_v25 = vadd.f32 %v4059_v6, %v4048_v8  ;;  %v4074_v4 = vadd.f32 %v4063_v62, %v4049_v51  ;;  %v4075_v41 = vadd.f32 %v4067_v44, %v4050_v39 }
 0x465   : > { %v4076_v50 = vmax.f32 %v4072_v45, 0.0  ;;  %v4077_v48 = vmax.f32 %v4073_v25, 0.0  ;;  %v4078_v42 = vmax.f32 %v4074_v4, 0.0  ;;  %v4079_v49 = vmax.f32 %v4075_v41, 0.0 }
 0x467   : > { %v4566_v7 = vpack.c.bf16 %v4077_v48, %v4076_v50  ;;  %v4567_v40 = vpack.c.bf16 %v4079_v49, %v4078_v42 }
 0x469   : > { %4096 = vst [vmem:[%s278_s28] sm:$0xff] %v4566_v7  ;;  %4097 = vst [vmem:[%s278_s28 + $0x8] sm:$0xff] %v4567_v40 }
 0x46a PF: > { %s17_s24 = sadd.s32 1, %s5515_s24  }
 0x46b   : > { %p14_p4 = scmp.ge.s32.totalorder %s17_s24, 4  }
 0x46d   :  { %16 = sbr.rel (!%p14_p4) target bundleno = 1 (0x1), region = 78 }

</bundles_post_ra>
